<compile_context>
chip_gen: v5e
topology: v5e:2x2
jax: 0.10.0
libtpu: 0.0.40
codegen_flags: <defaults>
</compile_context>

<pallas_src>
import jax
import jax.numpy as jnp
from jax.experimental import pallas as pl
from jax.experimental.pallas import tpu as pltpu

NUM_HIGHWAY_LAYERS = 10
BN_EPS = 1e-5
LANE = 128
MIB = 1024 * 1024


def _round_up(n, m):
    return (n + m - 1) // m * m


def _sigmoid(x):
    # sigmoid(x) == 0.5*(tanh(x/2)+1): one EUP transcendental instead of exp + divide.
    return 0.5 * (jnp.tanh(0.5 * x) + 1.0)


def _highway_step(h_f32, w_bf16, b_row, m):
    """One fused highway layer: z = h @ [Wg|Wn|Wl] + [bg|bn|bl]; gated combine."""
    z = jnp.dot(h_f32.astype(jnp.bfloat16), w_bf16,
                preferred_element_type=jnp.float32) + b_row          # [TB, 3*Mp] f32
    gate = _sigmoid(z[:, :m])
    nonlin = jnp.maximum(z[:, m:2 * m], 0.0)
    lin = z[:, 2 * m:]
    return lin + gate * (nonlin - lin)        # == gate*nonlin + (1-gate)*lin


# ---------------------------------------------------------------------------
# Variant A: all weights VMEM-resident, one grid step per batch tile.
# ---------------------------------------------------------------------------
def mirna_kernel_resident(x_ref, mask_ref, w1_ref, b1_ref, whw_ref, bhw_ref, out_ref):
    m = out_ref.shape[1]                                             # padded m_length
    x = x_ref[...] * mask_ref[...]                                   # bf16 [TB, Lp]
    # mirna_hidden1 (Linear) with eval-mode BatchNorm folded into w1/b1 by the wrapper
    h = jnp.dot(x, w1_ref[...], preferred_element_type=jnp.float32) + b1_ref[...]
    for layer in range(NUM_HIGHWAY_LAYERS):
        h = _highway_step(h, whw_ref[layer], bhw_ref[layer], m)
    # Dropout(p=0.3) is identity in eval mode; final sigmoid
    out_ref[...] = _sigmoid(h)


# ---------------------------------------------------------------------------
# Variant B: one highway layer's weight slab streamed per grid step (large m_length).
# h lives in the output block, which is resident across the layer grid axis.
# ---------------------------------------------------------------------------
def mirna_kernel_streamed(x_ref, mask_ref, w1_ref, b1_ref, whw_ref, bhw_ref, out_ref):
    m = out_ref.shape[1]
    layer = pl.program_id(1)
    n_layers = pl.num_programs(1)

    @pl.when(layer == 0)
    def _():
        x = x_ref[...] * mask_ref[...]
        out_ref[...] = (jnp.dot(x, w1_ref[...], preferred_element_type=jnp.float32)
                        + b1_ref[...])

    h = _highway_step(out_ref[...], whw_ref[0], bhw_ref[0], m)

    @pl.when(layer < n_layers - 1)
    def _():
        out_ref[...] = h

    @pl.when(layer == n_layers - 1)
    def _():
        out_ref[...] = _sigmoid(h)


def mirna_net_forward(x, mask, params, *, batch_tile=256, force_stream=False):
    """x: [B, mirna_length] float32, mask: [B, 1] float32 (per-sample keep mask)."""
    B, L = x.shape
    M = params["w1"].shape[1]
    Lyr = NUM_HIGHWAY_LAYERS

    Lp = _round_up(L, LANE)
    Mp = _round_up(M, LANE)
    # 16-row granularity (bf16 packs 16 sublanes per vreg); large tiles feed the MXU.
    batch_tile = max(16, _round_up(batch_tile, 16))
    TB = min(_round_up(B, 16), batch_tile)
    Bp = _round_up(B, TB)

    # ---- fold eval-mode BatchNorm1d into the first Linear ----
    w1 = params["w1"] * params["bn_scale"]                            # [L, M]
    b1 = params["b1"] * params["bn_scale"] + params["bn_shift"]       # [1, M]

    # ---- zero-pad feature axes to 128 lanes; fuse highway gate/nonlin/lin ----
    # Padded columns have zero weight/bias, so gate=0.5, nonlin=0, lin=0 and the padded
    # part of h stays exactly 0 through every highway layer.
    w1p = jnp.zeros((Lp, Mp), jnp.bfloat16).at[:L, :M].set(w1.astype(jnp.bfloat16))
    b1p = jnp.zeros((1, Mp), jnp.float32).at[:, :M].set(b1)

    def pad_w(w):   # [Lyr, M, M] -> [Lyr, Mp, Mp] bf16
        return jnp.zeros((Lyr, Mp, Mp), jnp.bfloat16).at[:, :M, :M].set(
            w.astype(jnp.bfloat16))

    def pad_b(b):   # [Lyr, 1, M] -> [Lyr, 1, Mp] f32
        return jnp.zeros((Lyr, 1, Mp), jnp.float32).at[:, :, :M].set(b)

    whw = jnp.concatenate(
        [pad_w(params["wg"]), pad_w(params["wn"]), pad_w(params["wl"])],
        axis=-1)                                                      # [Lyr, Mp, 3*Mp]
    bhw = jnp.concatenate(
        [pad_b(params["bg"]), pad_b(params["bn_h"]), pad_b(params["bl"])],
        axis=-1)                                                      # [Lyr, 1, 3*Mp]

    # ---- pad batch / input feature axes; stream x and mask as bf16 ----
    xp = jnp.zeros((Bp, Lp), jnp.bfloat16).at[:B, :L].set(x.astype(jnp.bfloat16))
    maskp = jnp.zeros((Bp, 1), jnp.bfloat16).at[:B, :].set(mask.astype(jnp.bfloat16))

    # ---- per-generation VMEM budget (never request more than physical VMEM) ----
    try:
        vmem_cap = int(pltpu.get_tpu_info().vmem_capacity_bytes)
    except Exception:
        vmem_cap = 64 * MIB            # conservative: v7x per-TensorCore VMEM
    vmem_budget = max(32 * MIB, min(vmem_cap - 8 * MIB, 112 * MIB))

    # Bytes common to both variants: streamed x/mask/out tiles (double-buffered) and
    # in-kernel intermediates (z [TB,3Mp] f32, h f32 + bf16 copies, temporaries).
    act_bytes = (2 * (TB * Lp * 2 + TB * LANE * 2)       # x / mask tiles (bf16)
                 + 2 * (TB * Mp * 4)                      # out tile (f32)
                 + 2 * (TB * 3 * Mp * 4)                  # z + gate/nonlin/lin temps
                 + TB * Mp * (4 + 2))                     # h f32 + bf16 recast
    w1_bytes = w1p.size * 2 + b1p.size * 4
    whw_bytes = whw.size * 2 + bhw.size * 4
    layer_bytes = (whw.size // Lyr) * 2 + (bhw.size // Lyr) * 4
    headroom = 2 * MIB                                    # compiler internal scratch

    vmem_resident = w1_bytes + whw_bytes + act_bytes + headroom   # weights 1x buffered
    vmem_streamed = w1_bytes + 2 * layer_bytes + act_bytes + headroom

    use_stream = force_stream or (vmem_resident > vmem_budget)

    if not use_stream:
        grid = (Bp // TB,)
        in_specs = [
            pl.BlockSpec((TB, Lp), lambda i: (i, 0)),                  # x tile
            pl.BlockSpec((TB, 1), lambda i: (i, 0)),                   # mask tile
            pl.BlockSpec((Lp, Mp), lambda i: (0, 0),
                         pipeline_mode=pl.Buffered(1)),                # w1 (resident)
            pl.BlockSpec((1, Mp), lambda i: (0, 0),
                         pipeline_mode=pl.Buffered(1)),                # b1 (resident)
            pl.BlockSpec((Lyr, Mp, 3 * Mp), lambda i: (0, 0, 0),
                         pipeline_mode=pl.Buffered(1)),                # highway weights
            pl.BlockSpec((Lyr, 1, 3 * Mp), lambda i: (0, 0, 0),
                         pipeline_mode=pl.Buffered(1)),                # highway biases
        ]
        out_specs = pl.BlockSpec((TB, Mp), lambda i: (i, 0))
        kernel = mirna_kernel_resident
        dim_sem = ("parallel",)
        vmem_need = vmem_resident
    else:
        # Stream one highway layer's [Mp, 3Mp] weight slab per grid step; the BlockSpec
        # pipeline prefetches layer l+1's slab during layer l's matmul.
        grid = (Bp // TB, Lyr)
        in_specs = [
            pl.BlockSpec((TB, Lp), lambda i, l: (i, 0)),               # x tile
            pl.BlockSpec((TB, 1), lambda i, l: (i, 0)),                # mask tile
            pl.BlockSpec((Lp, Mp), lambda i, l: (0, 0),
                         pipeline_mode=pl.Buffered(1)),                # w1 (resident)
            pl.BlockSpec((1, Mp), lambda i, l: (0, 0),
                         pipeline_mode=pl.Buffered(1)),                # b1 (resident)
            pl.BlockSpec((1, Mp, 3 * Mp), lambda i, l: (l, 0, 0)),     # layer weights
            pl.BlockSpec((1, 1, 3 * Mp), lambda i, l: (l, 0, 0)),      # layer biases
        ]
        out_specs = pl.BlockSpec((TB, Mp), lambda i, l: (i, 0))
        kernel = mirna_kernel_streamed
        dim_sem = ("parallel", "arbitrary")
        vmem_need = vmem_streamed

    vmem_limit = int(max(32 * MIB, min(vmem_need + 4 * MIB, vmem_budget)))

    # TODO(synk): on v7x, pltpu.CORE_PARALLEL on the batch axis (2 TensorCores) would be
    # a further ~2x for large B; kept plain "parallel" here for cross-generation safety.
    out_padded = pl.pallas_call(
        kernel,
        out_shape=jax.ShapeDtypeStruct((Bp, Mp), jnp.float32),
        grid=grid,
        in_specs=in_specs,
        out_specs=out_specs,
        compiler_params=pltpu.CompilerParams(
            dimension_semantics=dim_sem,
            vmem_limit_bytes=vmem_limit),
    )(xp, maskp, w1p, b1p, whw, bhw)

    return out_padded[:B, :M]


def init_params(key, mirna_length, m_length):
    """Deterministic synthetic parameter init (matches the module's shapes)."""
    keys = jax.random.split(key, 8)
    scale = 0.05
    # mirna_hidden1: Linear(mirna_length, m_length), stored transposed as [in, out]
    w1 = scale * jax.random.normal(keys[0], (mirna_length, m_length), jnp.float32)
    b1 = scale * jax.random.normal(keys[1], (1, m_length), jnp.float32)
    # bn1: BatchNorm1d(m_length), eval mode with default-initialized running stats
    gamma = jnp.ones((1, m_length), jnp.float32)
    beta = jnp.zeros((1, m_length), jnp.float32)
    running_mean = jnp.zeros((1, m_length), jnp.float32)
    running_var = jnp.ones((1, m_length), jnp.float32)
    bn_scale = gamma / jnp.sqrt(running_var + BN_EPS)
    bn_shift = beta - running_mean * bn_scale
    # Highway: 10 x {gate, nonlinear, linear} Linear(m_length, m_length), stored [in, out]
    L = NUM_HIGHWAY_LAYERS
    wg = scale * jax.random.normal(keys[2], (L, m_length, m_length), jnp.float32)
    bg = scale * jax.random.normal(keys[3], (L, 1, m_length), jnp.float32) - 1.0
    wn = scale * jax.random.normal(keys[4], (L, m_length, m_length), jnp.float32)
    bn_h = scale * jax.random.normal(keys[5], (L, 1, m_length), jnp.float32)
    wl = scale * jax.random.normal(keys[6], (L, m_length, m_length), jnp.float32)
    bl = scale * jax.random.normal(keys[7], (L, 1, m_length), jnp.float32)
    return dict(w1=w1, b1=b1, bn_scale=bn_scale, bn_shift=bn_shift,
                wg=wg, bg=bg, wn=wn, bn_h=bn_h, wl=wl, bl=bl)


def mirna_reference(x, mask, params):
    """Pure-JAX f32 reference of the original (unfused) eval-mode forward."""
    h = (x * mask) @ params["w1"] + params["b1"]
    h = h * params["bn_scale"] + params["bn_shift"]
    for layer in range(NUM_HIGHWAY_LAYERS):
        gate = jax.nn.sigmoid(h @ params["wg"][layer] + params["bg"][layer])
        nonlin = jax.nn.relu(h @ params["wn"][layer] + params["bn_h"][layer])
        lin = h @ params["wl"][layer] + params["bl"][layer]
        h = gate * nonlin + (1.0 - gate) * lin
    return jax.nn.sigmoid(h)


if __name__ == "__main__":
    B, MIRNA_LENGTH, M_LENGTH = 8, 64, 32

    key = jax.random.PRNGKey(0)
    kx, kmask, kp = jax.random.split(key, 3)

    x = jax.random.normal(kx, (B, MIRNA_LENGTH), jnp.float32)
    # _make_mask(shape, 0.1): keep an entire sample iff U(0,1) > 0.1.
    # TODO(synk): the PyTorch module draws this mask with np.random at forward time
    # (and uses train-mode BatchNorm / stochastic Dropout); here the mask is passed in
    # deterministically and eval-mode (deterministic) semantics are implemented.
    mask = (jax.random.uniform(kmask, (B, 1)) > 0.1).astype(jnp.float32)

    params = init_params(kp, MIRNA_LENGTH, M_LENGTH)
    ref = mirna_reference(x, mask, params)

    # resident-weights path (auto-selected at these sizes)
    out = mirna_net_forward(x, mask, params)
    out = jax.block_until_ready(out)
    assert out.shape == (B, M_LENGTH)
    assert bool(jnp.all(jnp.isfinite(out)))
    assert bool(jnp.all((out >= 0.0) & (out <= 1.0)))
    max_err = float(jnp.max(jnp.abs(out - ref)))
    assert max_err < 3e-2, f"resident path: max abs error {max_err} vs f32 reference"

    # layer-streaming path (used automatically for large m_length; exercised here)
    out_s = mirna_net_forward(x, mask, params, force_stream=True)
    out_s = jax.block_until_ready(out_s)
    max_err_s = float(jnp.max(jnp.abs(out_s - ref)))
    assert max_err_s < 3e-2, f"streamed path: max abs error {max_err_s} vs f32 reference"

    print("KERNEL_OK")
</pallas_src>

<mosaic_0001>
module attributes {stable_mosaic.version = 11 : i64} {
  func.func @mirna_kernel_resident(%arg0: i32, %arg1: memref<16x128xbf16, #tpu.memory_space<vmem>>, %arg2: memref<16x1xbf16, #tpu.memory_space<vmem>>, %arg3: memref<128x128xbf16, #tpu.memory_space<vmem>>, %arg4: memref<1x128xf32, #tpu.memory_space<vmem>>, %arg5: memref<10x128x384xbf16, #tpu.memory_space<vmem>>, %arg6: memref<10x1x384xf32, #tpu.memory_space<vmem>>, %arg7: memref<16x128xf32, #tpu.memory_space<vmem>>) attributes {dimension_semantics = [#tpu.dimension_semantics<parallel>], iteration_bounds = array<i64: 1>, scalar_prefetch = 0 : i64, scratch_operands = 0 : i64, tpu.core_type = #tpu.core_type<tc>, window_params = [{transform_indices = @transform_0, window_bounds = array<i64: 16, 128>}, {transform_indices = @transform_1, window_bounds = array<i64: 16, 1>}, {pipeline_mode = #tpu.pipeline_mode<synchronous>, transform_indices = @transform_2, window_bounds = array<i64: 128, 128>}, {pipeline_mode = #tpu.pipeline_mode<synchronous>, transform_indices = @transform_3, window_bounds = array<i64: 1, 128>}, {pipeline_mode = #tpu.pipeline_mode<synchronous>, transform_indices = @transform_4, window_bounds = array<i64: 10, 128, 384>}, {pipeline_mode = #tpu.pipeline_mode<synchronous>, transform_indices = @transform_5, window_bounds = array<i64: 10, 1, 384>}, {transform_indices = @transform_6, window_bounds = array<i64: 16, 128>}]} {
    %c0 = arith.constant 0 : index
    %c0_0 = arith.constant 0 : index
    %0 = vector.load %arg1[%c0, %c0_0] : memref<16x128xbf16, #tpu.memory_space<vmem>>, vector<16x128xbf16>
    %c0_1 = arith.constant 0 : index
    %c0_2 = arith.constant 0 : index
    %1 = vector.load %arg2[%c0_1, %c0_2] : memref<16x1xbf16, #tpu.memory_space<vmem>>, vector<16x1xbf16>
    %2 = vector.broadcast %1 : vector<16x1xbf16> to vector<16x128xbf16>
    %3 = arith.mulf %0, %2 : vector<16x128xbf16>
    %c0_3 = arith.constant 0 : index
    %c0_4 = arith.constant 0 : index
    %4 = vector.load %arg3[%c0_3, %c0_4] : memref<128x128xbf16, #tpu.memory_space<vmem>>, vector<128x128xbf16>
    %cst = arith.constant dense<0.000000e+00> : vector<16x128xf32>
    %5 = tpu.matmul %3, %4, %cst {dimension_numbers = #tpu.dot_dimension_numbers<[1], [0], [0], [1], [0, 0, 1, 1], [], []>} : vector<16x128xbf16>, vector<128x128xbf16>, vector<16x128xf32> -> vector<16x128xf32>
    %c0_5 = arith.constant 0 : index
    %c0_6 = arith.constant 0 : index
    %6 = vector.load %arg4[%c0_5, %c0_6] : memref<1x128xf32, #tpu.memory_space<vmem>>, vector<1x128xf32>
    %7 = vector.broadcast %6 : vector<1x128xf32> to vector<16x128xf32>
    %8 = arith.addf %5, %7 : vector<16x128xf32>
    %c0_7 = arith.constant 0 : index
    %c0_8 = arith.constant 0 : index
    %c0_9 = arith.constant 0 : index
    %9 = vector.load %arg5[%c0_7, %c0_8, %c0_9] : memref<10x128x384xbf16, #tpu.memory_space<vmem>>, vector<1x128x384xbf16>
    %10 = vector.shape_cast %9 : vector<1x128x384xbf16> to vector<128x384xbf16>
    %c0_10 = arith.constant 0 : index
    %c0_11 = arith.constant 0 : index
    %c0_12 = arith.constant 0 : index
    %11 = vector.load %arg6[%c0_10, %c0_11, %c0_12] : memref<10x1x384xf32, #tpu.memory_space<vmem>>, vector<1x1x384xf32>
    %12 = vector.shape_cast %11 : vector<1x1x384xf32> to vector<1x384xf32>
    %13 = arith.truncf %8 : vector<16x128xf32> to vector<16x128xbf16>
    %cst_13 = arith.constant dense<0.000000e+00> : vector<16x384xf32>
    %14 = tpu.matmul %13, %10, %cst_13 {dimension_numbers = #tpu.dot_dimension_numbers<[1], [0], [0], [1], [0, 0, 1, 1], [], []>} : vector<16x128xbf16>, vector<128x384xbf16>, vector<16x384xf32> -> vector<16x384xf32>
    %15 = vector.broadcast %12 : vector<1x384xf32> to vector<16x384xf32>
    %16 = arith.addf %14, %15 : vector<16x384xf32>
    %17 = vector.extract_strided_slice %16 {offsets = [0, 0], sizes = [16, 128], strides = [1, 1]} : vector<16x384xf32> to vector<16x128xf32>
    %cst_14 = arith.constant 5.000000e-01 : f32
    %18 = vector.broadcast %cst_14 : f32 to vector<16x128xf32>
    %19 = arith.mulf %18, %17 : vector<16x128xf32>
    %20 = math.tanh %19 : vector<16x128xf32>
    %cst_15 = arith.constant 1.000000e+00 : f32
    %21 = vector.broadcast %cst_15 : f32 to vector<16x128xf32>
    %22 = arith.addf %20, %21 : vector<16x128xf32>
    %cst_16 = arith.constant 5.000000e-01 : f32
    %23 = vector.broadcast %cst_16 : f32 to vector<16x128xf32>
    %24 = arith.mulf %23, %22 : vector<16x128xf32>
    %25 = vector.extract_strided_slice %16 {offsets = [0, 128], sizes = [16, 128], strides = [1, 1]} : vector<16x384xf32> to vector<16x128xf32>
    %cst_17 = arith.constant 0.000000e+00 : f32
    %26 = vector.broadcast %cst_17 : f32 to vector<16x128xf32>
    %27 = arith.maximumf %25, %26 : vector<16x128xf32>
    %28 = vector.extract_strided_slice %16 {offsets = [0, 256], sizes = [16, 128], strides = [1, 1]} : vector<16x384xf32> to vector<16x128xf32>
    %29 = arith.subf %27, %28 : vector<16x128xf32>
    %30 = arith.mulf %24, %29 : vector<16x128xf32>
    %31 = arith.addf %28, %30 : vector<16x128xf32>
    %c1 = arith.constant 1 : index
    %c0_18 = arith.constant 0 : index
    %c0_19 = arith.constant 0 : index
    %32 = vector.load %arg5[%c1, %c0_18, %c0_19] : memref<10x128x384xbf16, #tpu.memory_space<vmem>>, vector<1x128x384xbf16>
    %33 = vector.shape_cast %32 : vector<1x128x384xbf16> to vector<128x384xbf16>
    %c1_20 = arith.constant 1 : index
    %c0_21 = arith.constant 0 : index
    %c0_22 = arith.constant 0 : index
    %34 = vector.load %arg6[%c1_20, %c0_21, %c0_22] : memref<10x1x384xf32, #tpu.memory_space<vmem>>, vector<1x1x384xf32>
    %35 = vector.shape_cast %34 : vector<1x1x384xf32> to vector<1x384xf32>
    %36 = arith.truncf %31 : vector<16x128xf32> to vector<16x128xbf16>
    %cst_23 = arith.constant dense<0.000000e+00> : vector<16x384xf32>
    %37 = tpu.matmul %36, %33, %cst_23 {dimension_numbers = #tpu.dot_dimension_numbers<[1], [0], [0], [1], [0, 0, 1, 1], [], []>} : vector<16x128xbf16>, vector<128x384xbf16>, vector<16x384xf32> -> vector<16x384xf32>
    %38 = vector.broadcast %35 : vector<1x384xf32> to vector<16x384xf32>
    %39 = arith.addf %37, %38 : vector<16x384xf32>
    %40 = vector.extract_strided_slice %39 {offsets = [0, 0], sizes = [16, 128], strides = [1, 1]} : vector<16x384xf32> to vector<16x128xf32>
    %cst_24 = arith.constant 5.000000e-01 : f32
    %41 = vector.broadcast %cst_24 : f32 to vector<16x128xf32>
    %42 = arith.mulf %41, %40 : vector<16x128xf32>
    %43 = math.tanh %42 : vector<16x128xf32>
    %cst_25 = arith.constant 1.000000e+00 : f32
    %44 = vector.broadcast %cst_25 : f32 to vector<16x128xf32>
    %45 = arith.addf %43, %44 : vector<16x128xf32>
    %cst_26 = arith.constant 5.000000e-01 : f32
    %46 = vector.broadcast %cst_26 : f32 to vector<16x128xf32>
    %47 = arith.mulf %46, %45 : vector<16x128xf32>
    %48 = vector.extract_strided_slice %39 {offsets = [0, 128], sizes = [16, 128], strides = [1, 1]} : vector<16x384xf32> to vector<16x128xf32>
    %cst_27 = arith.constant 0.000000e+00 : f32
    %49 = vector.broadcast %cst_27 : f32 to vector<16x128xf32>
    %50 = arith.maximumf %48, %49 : vector<16x128xf32>
    %51 = vector.extract_strided_slice %39 {offsets = [0, 256], sizes = [16, 128], strides = [1, 1]} : vector<16x384xf32> to vector<16x128xf32>
    %52 = arith.subf %50, %51 : vector<16x128xf32>
    %53 = arith.mulf %47, %52 : vector<16x128xf32>
    %54 = arith.addf %51, %53 : vector<16x128xf32>
    %c2 = arith.constant 2 : index
    %c0_28 = arith.constant 0 : index
    %c0_29 = arith.constant 0 : index
    %55 = vector.load %arg5[%c2, %c0_28, %c0_29] : memref<10x128x384xbf16, #tpu.memory_space<vmem>>, vector<1x128x384xbf16>
    %56 = vector.shape_cast %55 : vector<1x128x384xbf16> to vector<128x384xbf16>
    %c2_30 = arith.constant 2 : index
    %c0_31 = arith.constant 0 : index
    %c0_32 = arith.constant 0 : index
    %57 = vector.load %arg6[%c2_30, %c0_31, %c0_32] : memref<10x1x384xf32, #tpu.memory_space<vmem>>, vector<1x1x384xf32>
    %58 = vector.shape_cast %57 : vector<1x1x384xf32> to vector<1x384xf32>
    %59 = arith.truncf %54 : vector<16x128xf32> to vector<16x128xbf16>
    %cst_33 = arith.constant dense<0.000000e+00> : vector<16x384xf32>
    %60 = tpu.matmul %59, %56, %cst_33 {dimension_numbers = #tpu.dot_dimension_numbers<[1], [0], [0], [1], [0, 0, 1, 1], [], []>} : vector<16x128xbf16>, vector<128x384xbf16>, vector<16x384xf32> -> vector<16x384xf32>
    %61 = vector.broadcast %58 : vector<1x384xf32> to vector<16x384xf32>
    %62 = arith.addf %60, %61 : vector<16x384xf32>
    %63 = vector.extract_strided_slice %62 {offsets = [0, 0], sizes = [16, 128], strides = [1, 1]} : vector<16x384xf32> to vector<16x128xf32>
    %cst_34 = arith.constant 5.000000e-01 : f32
    %64 = vector.broadcast %cst_34 : f32 to vector<16x128xf32>
    %65 = arith.mulf %64, %63 : vector<16x128xf32>
    %66 = math.tanh %65 : vector<16x128xf32>
    %cst_35 = arith.constant 1.000000e+00 : f32
    %67 = vector.broadcast %cst_35 : f32 to vector<16x128xf32>
    %68 = arith.addf %66, %67 : vector<16x128xf32>
    %cst_36 = arith.constant 5.000000e-01 : f32
    %69 = vector.broadcast %cst_36 : f32 to vector<16x128xf32>
    %70 = arith.mulf %69, %68 : vector<16x128xf32>
    %71 = vector.extract_strided_slice %62 {offsets = [0, 128], sizes = [16, 128], strides = [1, 1]} : vector<16x384xf32> to vector<16x128xf32>
    %cst_37 = arith.constant 0.000000e+00 : f32
    %72 = vector.broadcast %cst_37 : f32 to vector<16x128xf32>
    %73 = arith.maximumf %71, %72 : vector<16x128xf32>
    %74 = vector.extract_strided_slice %62 {offsets = [0, 256], sizes = [16, 128], strides = [1, 1]} : vector<16x384xf32> to vector<16x128xf32>
    %75 = arith.subf %73, %74 : vector<16x128xf32>
    %76 = arith.mulf %70, %75 : vector<16x128xf32>
    %77 = arith.addf %74, %76 : vector<16x128xf32>
    %c3 = arith.constant 3 : index
    %c0_38 = arith.constant 0 : index
    %c0_39 = arith.constant 0 : index
    %78 = vector.load %arg5[%c3, %c0_38, %c0_39] : memref<10x128x384xbf16, #tpu.memory_space<vmem>>, vector<1x128x384xbf16>
    %79 = vector.shape_cast %78 : vector<1x128x384xbf16> to vector<128x384xbf16>
    %c3_40 = arith.constant 3 : index
    %c0_41 = arith.constant 0 : index
    %c0_42 = arith.constant 0 : index
    %80 = vector.load %arg6[%c3_40, %c0_41, %c0_42] : memref<10x1x384xf32, #tpu.memory_space<vmem>>, vector<1x1x384xf32>
    %81 = vector.shape_cast %80 : vector<1x1x384xf32> to vector<1x384xf32>
    %82 = arith.truncf %77 : vector<16x128xf32> to vector<16x128xbf16>
    %cst_43 = arith.constant dense<0.000000e+00> : vector<16x384xf32>
    %83 = tpu.matmul %82, %79, %cst_43 {dimension_numbers = #tpu.dot_dimension_numbers<[1], [0], [0], [1], [0, 0, 1, 1], [], []>} : vector<16x128xbf16>, vector<128x384xbf16>, vector<16x384xf32> -> vector<16x384xf32>
    %84 = vector.broadcast %81 : vector<1x384xf32> to vector<16x384xf32>
    %85 = arith.addf %83, %84 : vector<16x384xf32>
    %86 = vector.extract_strided_slice %85 {offsets = [0, 0], sizes = [16, 128], strides = [1, 1]} : vector<16x384xf32> to vector<16x128xf32>
    %cst_44 = arith.constant 5.000000e-01 : f32
    %87 = vector.broadcast %cst_44 : f32 to vector<16x128xf32>
    %88 = arith.mulf %87, %86 : vector<16x128xf32>
    %89 = math.tanh %88 : vector<16x128xf32>
    %cst_45 = arith.constant 1.000000e+00 : f32
    %90 = vector.broadcast %cst_45 : f32 to vector<16x128xf32>
    %91 = arith.addf %89, %90 : vector<16x128xf32>
    %cst_46 = arith.constant 5.000000e-01 : f32
    %92 = vector.broadcast %cst_46 : f32 to vector<16x128xf32>
    %93 = arith.mulf %92, %91 : vector<16x128xf32>
    %94 = vector.extract_strided_slice %85 {offsets = [0, 128], sizes = [16, 128], strides = [1, 1]} : vector<16x384xf32> to vector<16x128xf32>
    %cst_47 = arith.constant 0.000000e+00 : f32
    %95 = vector.broadcast %cst_47 : f32 to vector<16x128xf32>
    %96 = arith.maximumf %94, %95 : vector<16x128xf32>
    %97 = vector.extract_strided_slice %85 {offsets = [0, 256], sizes = [16, 128], strides = [1, 1]} : vector<16x384xf32> to vector<16x128xf32>
    %98 = arith.subf %96, %97 : vector<16x128xf32>
    %99 = arith.mulf %93, %98 : vector<16x128xf32>
    %100 = arith.addf %97, %99 : vector<16x128xf32>
    %c4 = arith.constant 4 : index
    %c0_48 = arith.constant 0 : index
    %c0_49 = arith.constant 0 : index
    %101 = vector.load %arg5[%c4, %c0_48, %c0_49] : memref<10x128x384xbf16, #tpu.memory_space<vmem>>, vector<1x128x384xbf16>
    %102 = vector.shape_cast %101 : vector<1x128x384xbf16> to vector<128x384xbf16>
    %c4_50 = arith.constant 4 : index
    %c0_51 = arith.constant 0 : index
    %c0_52 = arith.constant 0 : index
    %103 = vector.load %arg6[%c4_50, %c0_51, %c0_52] : memref<10x1x384xf32, #tpu.memory_space<vmem>>, vector<1x1x384xf32>
    %104 = vector.shape_cast %103 : vector<1x1x384xf32> to vector<1x384xf32>
    %105 = arith.truncf %100 : vector<16x128xf32> to vector<16x128xbf16>
    %cst_53 = arith.constant dense<0.000000e+00> : vector<16x384xf32>
    %106 = tpu.matmul %105, %102, %cst_53 {dimension_numbers = #tpu.dot_dimension_numbers<[1], [0], [0], [1], [0, 0, 1, 1], [], []>} : vector<16x128xbf16>, vector<128x384xbf16>, vector<16x384xf32> -> vector<16x384xf32>
    %107 = vector.broadcast %104 : vector<1x384xf32> to vector<16x384xf32>
    %108 = arith.addf %106, %107 : vector<16x384xf32>
    %109 = vector.extract_strided_slice %108 {offsets = [0, 0], sizes = [16, 128], strides = [1, 1]} : vector<16x384xf32> to vector<16x128xf32>
    %cst_54 = arith.constant 5.000000e-01 : f32
    %110 = vector.broadcast %cst_54 : f32 to vector<16x128xf32>
    %111 = arith.mulf %110, %109 : vector<16x128xf32>
    %112 = math.tanh %111 : vector<16x128xf32>
    %cst_55 = arith.constant 1.000000e+00 : f32
    %113 = vector.broadcast %cst_55 : f32 to vector<16x128xf32>
    %114 = arith.addf %112, %113 : vector<16x128xf32>
    %cst_56 = arith.constant 5.000000e-01 : f32
    %115 = vector.broadcast %cst_56 : f32 to vector<16x128xf32>
    %116 = arith.mulf %115, %114 : vector<16x128xf32>
    %117 = vector.extract_strided_slice %108 {offsets = [0, 128], sizes = [16, 128], strides = [1, 1]} : vector<16x384xf32> to vector<16x128xf32>
    %cst_57 = arith.constant 0.000000e+00 : f32
    %118 = vector.broadcast %cst_57 : f32 to vector<16x128xf32>
    %119 = arith.maximumf %117, %118 : vector<16x128xf32>
    %120 = vector.extract_strided_slice %108 {offsets = [0, 256], sizes = [16, 128], strides = [1, 1]} : vector<16x384xf32> to vector<16x128xf32>
    %121 = arith.subf %119, %120 : vector<16x128xf32>
    %122 = arith.mulf %116, %121 : vector<16x128xf32>
    %123 = arith.addf %120, %122 : vector<16x128xf32>
    %c5 = arith.constant 5 : index
    %c0_58 = arith.constant 0 : index
    %c0_59 = arith.constant 0 : index
    %124 = vector.load %arg5[%c5, %c0_58, %c0_59] : memref<10x128x384xbf16, #tpu.memory_space<vmem>>, vector<1x128x384xbf16>
    %125 = vector.shape_cast %124 : vector<1x128x384xbf16> to vector<128x384xbf16>
    %c5_60 = arith.constant 5 : index
    %c0_61 = arith.constant 0 : index
    %c0_62 = arith.constant 0 : index
    %126 = vector.load %arg6[%c5_60, %c0_61, %c0_62] : memref<10x1x384xf32, #tpu.memory_space<vmem>>, vector<1x1x384xf32>
    %127 = vector.shape_cast %126 : vector<1x1x384xf32> to vector<1x384xf32>
    %128 = arith.truncf %123 : vector<16x128xf32> to vector<16x128xbf16>
    %cst_63 = arith.constant dense<0.000000e+00> : vector<16x384xf32>
    %129 = tpu.matmul %128, %125, %cst_63 {dimension_numbers = #tpu.dot_dimension_numbers<[1], [0], [0], [1], [0, 0, 1, 1], [], []>} : vector<16x128xbf16>, vector<128x384xbf16>, vector<16x384xf32> -> vector<16x384xf32>
    %130 = vector.broadcast %127 : vector<1x384xf32> to vector<16x384xf32>
    %131 = arith.addf %129, %130 : vector<16x384xf32>
    %132 = vector.extract_strided_slice %131 {offsets = [0, 0], sizes = [16, 128], strides = [1, 1]} : vector<16x384xf32> to vector<16x128xf32>
    %cst_64 = arith.constant 5.000000e-01 : f32
    %133 = vector.broadcast %cst_64 : f32 to vector<16x128xf32>
    %134 = arith.mulf %133, %132 : vector<16x128xf32>
    %135 = math.tanh %134 : vector<16x128xf32>
    %cst_65 = arith.constant 1.000000e+00 : f32
    %136 = vector.broadcast %cst_65 : f32 to vector<16x128xf32>
    %137 = arith.addf %135, %136 : vector<16x128xf32>
    %cst_66 = arith.constant 5.000000e-01 : f32
    %138 = vector.broadcast %cst_66 : f32 to vector<16x128xf32>
    %139 = arith.mulf %138, %137 : vector<16x128xf32>
    %140 = vector.extract_strided_slice %131 {offsets = [0, 128], sizes = [16, 128], strides = [1, 1]} : vector<16x384xf32> to vector<16x128xf32>
    %cst_67 = arith.constant 0.000000e+00 : f32
    %141 = vector.broadcast %cst_67 : f32 to vector<16x128xf32>
    %142 = arith.maximumf %140, %141 : vector<16x128xf32>
    %143 = vector.extract_strided_slice %131 {offsets = [0, 256], sizes = [16, 128], strides = [1, 1]} : vector<16x384xf32> to vector<16x128xf32>
    %144 = arith.subf %142, %143 : vector<16x128xf32>
    %145 = arith.mulf %139, %144 : vector<16x128xf32>
    %146 = arith.addf %143, %145 : vector<16x128xf32>
    %c6 = arith.constant 6 : index
    %c0_68 = arith.constant 0 : index
    %c0_69 = arith.constant 0 : index
    %147 = vector.load %arg5[%c6, %c0_68, %c0_69] : memref<10x128x384xbf16, #tpu.memory_space<vmem>>, vector<1x128x384xbf16>
    %148 = vector.shape_cast %147 : vector<1x128x384xbf16> to vector<128x384xbf16>
    %c6_70 = arith.constant 6 : index
    %c0_71 = arith.constant 0 : index
    %c0_72 = arith.constant 0 : index
    %149 = vector.load %arg6[%c6_70, %c0_71, %c0_72] : memref<10x1x384xf32, #tpu.memory_space<vmem>>, vector<1x1x384xf32>
    %150 = vector.shape_cast %149 : vector<1x1x384xf32> to vector<1x384xf32>
    %151 = arith.truncf %146 : vector<16x128xf32> to vector<16x128xbf16>
    %cst_73 = arith.constant dense<0.000000e+00> : vector<16x384xf32>
    %152 = tpu.matmul %151, %148, %cst_73 {dimension_numbers = #tpu.dot_dimension_numbers<[1], [0], [0], [1], [0, 0, 1, 1], [], []>} : vector<16x128xbf16>, vector<128x384xbf16>, vector<16x384xf32> -> vector<16x384xf32>
    %153 = vector.broadcast %150 : vector<1x384xf32> to vector<16x384xf32>
    %154 = arith.addf %152, %153 : vector<16x384xf32>
    %155 = vector.extract_strided_slice %154 {offsets = [0, 0], sizes = [16, 128], strides = [1, 1]} : vector<16x384xf32> to vector<16x128xf32>
    %cst_74 = arith.constant 5.000000e-01 : f32
    %156 = vector.broadcast %cst_74 : f32 to vector<16x128xf32>
    %157 = arith.mulf %156, %155 : vector<16x128xf32>
    %158 = math.tanh %157 : vector<16x128xf32>
    %cst_75 = arith.constant 1.000000e+00 : f32
    %159 = vector.broadcast %cst_75 : f32 to vector<16x128xf32>
    %160 = arith.addf %158, %159 : vector<16x128xf32>
    %cst_76 = arith.constant 5.000000e-01 : f32
    %161 = vector.broadcast %cst_76 : f32 to vector<16x128xf32>
    %162 = arith.mulf %161, %160 : vector<16x128xf32>
    %163 = vector.extract_strided_slice %154 {offsets = [0, 128], sizes = [16, 128], strides = [1, 1]} : vector<16x384xf32> to vector<16x128xf32>
    %cst_77 = arith.constant 0.000000e+00 : f32
    %164 = vector.broadcast %cst_77 : f32 to vector<16x128xf32>
    %165 = arith.maximumf %163, %164 : vector<16x128xf32>
    %166 = vector.extract_strided_slice %154 {offsets = [0, 256], sizes = [16, 128], strides = [1, 1]} : vector<16x384xf32> to vector<16x128xf32>
    %167 = arith.subf %165, %166 : vector<16x128xf32>
    %168 = arith.mulf %162, %167 : vector<16x128xf32>
    %169 = arith.addf %166, %168 : vector<16x128xf32>
    %c7 = arith.constant 7 : index
    %c0_78 = arith.constant 0 : index
    %c0_79 = arith.constant 0 : index
    %170 = vector.load %arg5[%c7, %c0_78, %c0_79] : memref<10x128x384xbf16, #tpu.memory_space<vmem>>, vector<1x128x384xbf16>
    %171 = vector.shape_cast %170 : vector<1x128x384xbf16> to vector<128x384xbf16>
    %c7_80 = arith.constant 7 : index
    %c0_81 = arith.constant 0 : index
    %c0_82 = arith.constant 0 : index
    %172 = vector.load %arg6[%c7_80, %c0_81, %c0_82] : memref<10x1x384xf32, #tpu.memory_space<vmem>>, vector<1x1x384xf32>
    %173 = vector.shape_cast %172 : vector<1x1x384xf32> to vector<1x384xf32>
    %174 = arith.truncf %169 : vector<16x128xf32> to vector<16x128xbf16>
    %cst_83 = arith.constant dense<0.000000e+00> : vector<16x384xf32>
    %175 = tpu.matmul %174, %171, %cst_83 {dimension_numbers = #tpu.dot_dimension_numbers<[1], [0], [0], [1], [0, 0, 1, 1], [], []>} : vector<16x128xbf16>, vector<128x384xbf16>, vector<16x384xf32> -> vector<16x384xf32>
    %176 = vector.broadcast %173 : vector<1x384xf32> to vector<16x384xf32>
    %177 = arith.addf %175, %176 : vector<16x384xf32>
    %178 = vector.extract_strided_slice %177 {offsets = [0, 0], sizes = [16, 128], strides = [1, 1]} : vector<16x384xf32> to vector<16x128xf32>
    %cst_84 = arith.constant 5.000000e-01 : f32
    %179 = vector.broadcast %cst_84 : f32 to vector<16x128xf32>
    %180 = arith.mulf %179, %178 : vector<16x128xf32>
    %181 = math.tanh %180 : vector<16x128xf32>
    %cst_85 = arith.constant 1.000000e+00 : f32
    %182 = vector.broadcast %cst_85 : f32 to vector<16x128xf32>
    %183 = arith.addf %181, %182 : vector<16x128xf32>
    %cst_86 = arith.constant 5.000000e-01 : f32
    %184 = vector.broadcast %cst_86 : f32 to vector<16x128xf32>
    %185 = arith.mulf %184, %183 : vector<16x128xf32>
    %186 = vector.extract_strided_slice %177 {offsets = [0, 128], sizes = [16, 128], strides = [1, 1]} : vector<16x384xf32> to vector<16x128xf32>
    %cst_87 = arith.constant 0.000000e+00 : f32
    %187 = vector.broadcast %cst_87 : f32 to vector<16x128xf32>
    %188 = arith.maximumf %186, %187 : vector<16x128xf32>
    %189 = vector.extract_strided_slice %177 {offsets = [0, 256], sizes = [16, 128], strides = [1, 1]} : vector<16x384xf32> to vector<16x128xf32>
    %190 = arith.subf %188, %189 : vector<16x128xf32>
    %191 = arith.mulf %185, %190 : vector<16x128xf32>
    %192 = arith.addf %189, %191 : vector<16x128xf32>
    %c8 = arith.constant 8 : index
    %c0_88 = arith.constant 0 : index
    %c0_89 = arith.constant 0 : index
    %193 = vector.load %arg5[%c8, %c0_88, %c0_89] : memref<10x128x384xbf16, #tpu.memory_space<vmem>>, vector<1x128x384xbf16>
    %194 = vector.shape_cast %193 : vector<1x128x384xbf16> to vector<128x384xbf16>
    %c8_90 = arith.constant 8 : index
    %c0_91 = arith.constant 0 : index
    %c0_92 = arith.constant 0 : index
    %195 = vector.load %arg6[%c8_90, %c0_91, %c0_92] : memref<10x1x384xf32, #tpu.memory_space<vmem>>, vector<1x1x384xf32>
    %196 = vector.shape_cast %195 : vector<1x1x384xf32> to vector<1x384xf32>
    %197 = arith.truncf %192 : vector<16x128xf32> to vector<16x128xbf16>
    %cst_93 = arith.constant dense<0.000000e+00> : vector<16x384xf32>
    %198 = tpu.matmul %197, %194, %cst_93 {dimension_numbers = #tpu.dot_dimension_numbers<[1], [0], [0], [1], [0, 0, 1, 1], [], []>} : vector<16x128xbf16>, vector<128x384xbf16>, vector<16x384xf32> -> vector<16x384xf32>
    %199 = vector.broadcast %196 : vector<1x384xf32> to vector<16x384xf32>
    %200 = arith.addf %198, %199 : vector<16x384xf32>
    %201 = vector.extract_strided_slice %200 {offsets = [0, 0], sizes = [16, 128], strides = [1, 1]} : vector<16x384xf32> to vector<16x128xf32>
    %cst_94 = arith.constant 5.000000e-01 : f32
    %202 = vector.broadcast %cst_94 : f32 to vector<16x128xf32>
    %203 = arith.mulf %202, %201 : vector<16x128xf32>
    %204 = math.tanh %203 : vector<16x128xf32>
    %cst_95 = arith.constant 1.000000e+00 : f32
    %205 = vector.broadcast %cst_95 : f32 to vector<16x128xf32>
    %206 = arith.addf %204, %205 : vector<16x128xf32>
    %cst_96 = arith.constant 5.000000e-01 : f32
    %207 = vector.broadcast %cst_96 : f32 to vector<16x128xf32>
    %208 = arith.mulf %207, %206 : vector<16x128xf32>
    %209 = vector.extract_strided_slice %200 {offsets = [0, 128], sizes = [16, 128], strides = [1, 1]} : vector<16x384xf32> to vector<16x128xf32>
    %cst_97 = arith.constant 0.000000e+00 : f32
    %210 = vector.broadcast %cst_97 : f32 to vector<16x128xf32>
    %211 = arith.maximumf %209, %210 : vector<16x128xf32>
    %212 = vector.extract_strided_slice %200 {offsets = [0, 256], sizes = [16, 128], strides = [1, 1]} : vector<16x384xf32> to vector<16x128xf32>
    %213 = arith.subf %211, %212 : vector<16x128xf32>
    %214 = arith.mulf %208, %213 : vector<16x128xf32>
    %215 = arith.addf %212, %214 : vector<16x128xf32>
    %c9 = arith.constant 9 : index
    %c0_98 = arith.constant 0 : index
    %c0_99 = arith.constant 0 : index
    %216 = vector.load %arg5[%c9, %c0_98, %c0_99] : memref<10x128x384xbf16, #tpu.memory_space<vmem>>, vector<1x128x384xbf16>
    %217 = vector.shape_cast %216 : vector<1x128x384xbf16> to vector<128x384xbf16>
    %c9_100 = arith.constant 9 : index
    %c0_101 = arith.constant 0 : index
    %c0_102 = arith.constant 0 : index
    %218 = vector.load %arg6[%c9_100, %c0_101, %c0_102] : memref<10x1x384xf32, #tpu.memory_space<vmem>>, vector<1x1x384xf32>
    %219 = vector.shape_cast %218 : vector<1x1x384xf32> to vector<1x384xf32>
    %220 = arith.truncf %215 : vector<16x128xf32> to vector<16x128xbf16>
    %cst_103 = arith.constant dense<0.000000e+00> : vector<16x384xf32>
    %221 = tpu.matmul %220, %217, %cst_103 {dimension_numbers = #tpu.dot_dimension_numbers<[1], [0], [0], [1], [0, 0, 1, 1], [], []>} : vector<16x128xbf16>, vector<128x384xbf16>, vector<16x384xf32> -> vector<16x384xf32>
    %222 = vector.broadcast %219 : vector<1x384xf32> to vector<16x384xf32>
    %223 = arith.addf %221, %222 : vector<16x384xf32>
    %224 = vector.extract_strided_slice %223 {offsets = [0, 0], sizes = [16, 128], strides = [1, 1]} : vector<16x384xf32> to vector<16x128xf32>
    %cst_104 = arith.constant 5.000000e-01 : f32
    %225 = vector.broadcast %cst_104 : f32 to vector<16x128xf32>
    %226 = arith.mulf %225, %224 : vector<16x128xf32>
    %227 = math.tanh %226 : vector<16x128xf32>
    %cst_105 = arith.constant 1.000000e+00 : f32
    %228 = vector.broadcast %cst_105 : f32 to vector<16x128xf32>
    %229 = arith.addf %227, %228 : vector<16x128xf32>
    %cst_106 = arith.constant 5.000000e-01 : f32
    %230 = vector.broadcast %cst_106 : f32 to vector<16x128xf32>
    %231 = arith.mulf %230, %229 : vector<16x128xf32>
    %232 = vector.extract_strided_slice %223 {offsets = [0, 128], sizes = [16, 128], strides = [1, 1]} : vector<16x384xf32> to vector<16x128xf32>
    %cst_107 = arith.constant 0.000000e+00 : f32
    %233 = vector.broadcast %cst_107 : f32 to vector<16x128xf32>
    %234 = arith.maximumf %232, %233 : vector<16x128xf32>
    %235 = vector.extract_strided_slice %223 {offsets = [0, 256], sizes = [16, 128], strides = [1, 1]} : vector<16x384xf32> to vector<16x128xf32>
    %236 = arith.subf %234, %235 : vector<16x128xf32>
    %237 = arith.mulf %231, %236 : vector<16x128xf32>
    %238 = arith.addf %235, %237 : vector<16x128xf32>
    %cst_108 = arith.constant 5.000000e-01 : f32
    %239 = vector.broadcast %cst_108 : f32 to vector<16x128xf32>
    %240 = arith.mulf %239, %238 : vector<16x128xf32>
    %241 = math.tanh %240 : vector<16x128xf32>
    %cst_109 = arith.constant 1.000000e+00 : f32
    %242 = vector.broadcast %cst_109 : f32 to vector<16x128xf32>
    %243 = arith.addf %241, %242 : vector<16x128xf32>
    %cst_110 = arith.constant 5.000000e-01 : f32
    %244 = vector.broadcast %cst_110 : f32 to vector<16x128xf32>
    %245 = arith.mulf %244, %243 : vector<16x128xf32>
    %c0_111 = arith.constant 0 : index
    %c0_112 = arith.constant 0 : index
    %246 = vector.load %arg7[%c0_111, %c0_112] : memref<16x128xf32, #tpu.memory_space<vmem>>, vector<16x128xf32>
    tpu.vector_store %arg7[%c0_111, %c0_112], %245 {strides = array<i32>} : memref<16x128xf32, #tpu.memory_space<vmem>>, vector<16x128xf32>,
    return
  }
  func.func @transform_0(%arg0: i32) -> (i32, i32) {
    %c0_i32 = arith.constant 0 : i32
    %c0_i32_0 = arith.constant 0 : i32
    return %arg0, %c0_i32 : i32, i32
  }
  func.func @transform_1(%arg0: i32) -> (i32, i32) {
    %c0_i32 = arith.constant 0 : i32
    %c0_i32_0 = arith.constant 0 : i32
    return %arg0, %c0_i32 : i32, i32
  }
  func.func @transform_2(%arg0: i32) -> (i32, i32) {
    %c0_i32 = arith.constant 0 : i32
    %c0_i32_0 = arith.constant 0 : i32
    %c0_i32_1 = arith.constant 0 : i32
    return %c0_i32, %c0_i32_0 : i32, i32
  }
  func.func @transform_3(%arg0: i32) -> (i32, i32) {
    %c0_i32 = arith.constant 0 : i32
    %c0_i32_0 = arith.constant 0 : i32
    %c0_i32_1 = arith.constant 0 : i32
    return %c0_i32, %c0_i32_0 : i32, i32
  }
  func.func @transform_4(%arg0: i32) -> (i32, i32, i32) {
    %c0_i32 = arith.constant 0 : i32
    %c0_i32_0 = arith.constant 0 : i32
    %c0_i32_1 = arith.constant 0 : i32
    %c0_i32_2 = arith.constant 0 : i32
    return %c0_i32, %c0_i32_0, %c0_i32_1 : i32, i32, i32
  }
  func.func @transform_5(%arg0: i32) -> (i32, i32, i32) {
    %c0_i32 = arith.constant 0 : i32
    %c0_i32_0 = arith.constant 0 : i32
    %c0_i32_1 = arith.constant 0 : i32
    %c0_i32_2 = arith.constant 0 : i32
    return %c0_i32, %c0_i32_0, %c0_i32_1 : i32, i32, i32
  }
  func.func @transform_6(%arg0: i32) -> (i32, i32) {
    %c0_i32 = arith.constant 0 : i32
    %c0_i32_0 = arith.constant 0 : i32
    return %arg0, %c0_i32 : i32, i32
  }
}

</mosaic_0001>

<bundles_post_ra>
// kernel: tpu_custom_call.1
= control target key start
LH: loop header
LB: loop body
LE: loop exit
PB: predicated region body
PF: predicated region fallthrough
CT: control target
= control target key end

     0   :  { %11 = vsyncpa [#allocation3], 0  ;;  %s3979_s0 = inlined_call_operand.vmem [shape: bf16[16,128], index: 0, kind: input, shape index: {}]   ;;  %s3980_s1 = inlined_call_operand.vmem [shape: bf16[16,1], index: 1, kind: input, shape index: {}]   ;;  %s3981_s2 = inlined_call_operand.hbm [shape: bf16[128,128], index: 2, kind: input, shape index: {}]   ;;  %s3982_s3 = inlined_call_operand.vmem [shape: f32[1,128], index: 3, kind: input, shape index: {}]   ;;  %s3983_s4 = inlined_call_operand.hbm [shape: bf16[10,128,384], index: 4, kind: input, shape index: {}]   ;;  %s3984_s5 = inlined_call_operand.hbm [shape: f32[10,1,384], index: 5, kind: input, shape index: {}]   ;;  %s3985_s6 = inlined_call_operand.hbm [shape: f32[16,128], index: 6, kind: output, shape index: {}]  }
   0x1   :  { %12 = vsyncpa [#allocation6], 0  ;;  %s37_s23 = sshll.u32 %s3983_s4, 4  ;;  %s38_s23 = int_to_ptr.hbm [resolvable:$true] %s37_s23 }
   0x2   :  { %13 = vsyncpa [#allocation4], 0  ;;  %s3906_s24 = smov [#allocation5]   ;;  %s22_s28 = sshll.u32 %s3981_s2, 4  ;;  %s23_s28 = int_to_ptr.hbm [resolvable:$true] %s22_s28 }
   0x3   :  { %s39_s25 = sshll.u32 %s3906_s24, 4  ;;  %s3907_s29 = smov 192   ;;  %s40_s25 = int_to_ptr.vmem [resolvable:$true] %s39_s25 }
   0x4   :  { %s3908_s30 = smov 12   ;;  %s3909_s7 = smov [#allocation2]  }
   0x5   :  { %45 = dma.hbm_to_vmem [thread:$0]  %s38_s23, 30720, %s40_s25, [#allocation6], %s3907_s29, %s3907_s29, %s3908_s30  }
   0x6   :  { %s24_s8 = sshll.u32 %s3909_s7, 4  ;;  %s3910_s9 = smov 64   ;;  %s25_s8 = int_to_ptr.vmem [resolvable:$true] %s24_s8 }
   0x7   :  { %s3911_s10 = smov 4   ;;  %s50_s12 = sshll.u32 %s3984_s5, 4  ;;  %s51_s12 = int_to_ptr.hbm [resolvable:$true] %s50_s12 }
   0x8   :  { %30 = dma.hbm_to_vmem [thread:$0]  %s23_s28, 1024, %s25_s8, [#allocation3], %s3910_s9, %s3910_s9, %s3911_s10  }
   0x9   :  { %s3912_s13 = smov [#allocation7]   ;;  %s3913_s15 = smov 48  }
   0xa   :  { %s52_s14 = sshll.u32 %s3912_s13, 4  ;;  %s3914_s2 = smov 3   ;;  %s53_s14 = int_to_ptr.vmem [resolvable:$true] %s52_s14 }
   0xb   :  { %58 = dma.hbm_to_vmem [thread:$0]  %s51_s12, 480, %s53_s14, [#allocation6], %s3913_s15, %s3913_s15, %s3914_s2  }
   0xc   :  { %3900 = dma.done.wait [#allocation3], 1024  }
   0xd   :  { %3901 = vsyncadd [#allocation3], 4294966272 }
   0xe   :  { %3902 = dma.done.wait [#allocation6], 31200  }
   0xf   :  { %3903 = vsyncadd [#allocation6], 4294936096  ;;  %v3915_v0 = vmov 0   ;;  %v73_v1 = vld [vmem:[%s3980_s1] sm:$0xf]  ;;  %v3499_v2 = vld [vmem:[#allocation2 + $0x38] sm:$0xff] }
  0x10   :  { %3758 = vset.pattern.permute.xlu0 %v3915_v0  ;;  %168 = vmatpush.bf16.msra.mxu0 %v3499_v2  ;;  %v3498_v3 = vld [vmem:[#allocation2 + $0x30] sm:$0xff]  ;;  %v74_v4 = vld [vmem:[%s3980_s1 + $0x4] sm:$0xf]  ;;  %v3497_v5 = vld [vmem:[#allocation2 + $0x28] sm:$0xff]  ;;  %v3916_v45 = vmov 839922192  }
  0x11   :  { %77 = vperm.xlu0 %3758, %v73_v1   ;;  %v3496_v6 = vld [vmem:[#allocation2 + $0x20] sm:$0xff]  ;;  %v3495_v7 = vld [vmem:[#allocation2 + $0x18] sm:$0xff]  ;;  %v3494_v8 = vld [vmem:[#allocation2 + $0x10] sm:$0xff]  ;;  %v81_v46 = vunpack.c.l.s4 %v3916_v45  ;;  %s2486_s24 = sshll.u32 %s3985_s6, 4  ;;  %s3918_s25 = smov 128   ;;  %s2487_s24 = int_to_ptr.hbm [resolvable:$true] %s2486_s24 }
  0x12   :  { %v3493_v9 = vld [vmem:[#allocation2 + $0x8] sm:$0xff]  ;;  %v3492_v10 = vld [vmem:[#allocation2] sm:$0xff]  ;;  %v3522_v12 = vld [vmem:[#allocation5 + $0xb0] sm:$0xf0]  ;;  %s3919_s26 = smov 8  }
  0x13   :  { %v2618_v11 = vld [vmem:[#allocation5 + $0xa8] sm:$0xf]  ;;  %v3521_v13 = vld [vmem:[#allocation5 + $0xac] sm:$0xf]  ;;  %v2620_v15 = vld [vmem:[#allocation5 + $0xb4] sm:$0xf0]  ;;  %v82_v57 = vunpack.c.0.s8 %v81_v46 }
  0x14   :  { %169 = vmatpush.bf16.msra.mxu0 %v3498_v3  ;;  %v2619_v14 = vor.u32 %v3522_v12, %v2618_v11  ;;  %v2626_v16 = vld [vmem:[#allocation5 + $0xb0] sm:$0xf]  ;;  %v3523_v17 = vld [vmem:[#allocation5 + $0xb8] sm:$0xf0]  ;;  %v2623_v18 = vor.u32 %v3521_v13, %v2620_v15  ;;  %v3518_v22 = vld [vmem:[#allocation5 + $0x94] sm:$0xf] }
  0x15   :  { %v2627_v19 = vor.u32 %v3523_v17, %v2626_v16  ;;  %v2606_v20 = vld [vmem:[#allocation5 + $0x90] sm:$0xf]  ;;  %v3519_v21 = vld [vmem:[#allocation5 + $0x98] sm:$0xf0]  ;;  %v2608_v24 = vld [vmem:[#allocation5 + $0x9c] sm:$0xf0] }
  0x16   :  { %351 = vmatpush.bf16.msra.mxu1 %v2619_v14  ;;  %v2607_v23 = vor.u32 %v3519_v21, %v2606_v20  ;;  %v2614_v25 = vld [vmem:[#allocation5 + $0x98] sm:$0xf]  ;;  %v3520_v26 = vld [vmem:[#allocation5 + $0xa0] sm:$0xf0]  ;;  %365 = vmatpush.bf16.msra.mxu2 %v2623_v18  ;;  %v2611_v27 = vor.u32 %v3518_v22, %v2608_v24  ;;  %v3515_v31 = vld [vmem:[#allocation5 + $0x7c] sm:$0xf] }
  0x17   :  { %379 = vmatpush.bf16.msra.mxu3 %v2627_v19  ;;  %v2615_v28 = vor.u32 %v3520_v26, %v2614_v25  ;;  %v2594_v29 = vld [vmem:[#allocation5 + $0x78] sm:$0xf]  ;;  %v3516_v30 = vld [vmem:[#allocation5 + $0x80] sm:$0xf0]  ;;  %v2596_v32 = vld [vmem:[#allocation5 + $0x84] sm:$0xf0] }
  0x18   :  { %170 = vmatpush.bf16.msra.mxu0 %v3497_v5  ;;  %v2602_v33 = vld [vmem:[#allocation5 + $0x80] sm:$0xf]  ;;  %v3517_v34 = vld [vmem:[#allocation5 + $0x88] sm:$0xf0]  ;;  %v2595_v35 = vor.u32 %v3516_v30, %v2594_v29  ;;  %v2599_v36 = vor.u32 %v3515_v31, %v2596_v32  ;;  %v3512_v40 = vld [vmem:[#allocation5 + $0x64] sm:$0xf] }
  0x19   :  { %86 = vperm.xlu0 %3758, %v74_v4   ;;  %v2603_v37 = vor.u32 %v3517_v34, %v2602_v33  ;;  %v2582_v38 = vld [vmem:[#allocation5 + $0x60] sm:$0xf]  ;;  %v3513_v39 = vld [vmem:[#allocation5 + $0x68] sm:$0xf0]  ;;  %v2584_v41 = vld [vmem:[#allocation5 + $0x6c] sm:$0xf0] }
  0x1a   :  { %352 = vmatpush.bf16.msra.mxu1 %v2607_v23  ;;  %366 = vmatpush.bf16.msra.mxu2 %v2611_v27  ;;  %v2590_v42 = vld [vmem:[#allocation5 + $0x68] sm:$0xf]  ;;  %v3514_v43 = vld [vmem:[#allocation5 + $0x70] sm:$0xf0]  ;;  %v2583_v44 = vor.u32 %v3513_v39, %v2582_v38  ;;  %v2587_v47 = vor.u32 %v3512_v40, %v2584_v41  ;;  %v3509_v51 = vld [vmem:[#allocation5 + $0x4c] sm:$0xf] }
  0x1b   :  { %380 = vmatpush.bf16.msra.mxu3 %v2615_v28  ;;  %v2591_v48 = vor.u32 %v3514_v43, %v2590_v42  ;;  %v2570_v49 = vld [vmem:[#allocation5 + $0x48] sm:$0xf]  ;;  %v3510_v50 = vld [vmem:[#allocation5 + $0x50] sm:$0xf0]  ;;  %v2572_v52 = vld [vmem:[#allocation5 + $0x54] sm:$0xf0] }
  0x1c   :  { %171 = vmatpush.bf16.msra.mxu0 %v3496_v6  ;;  %v2578_v53 = vld [vmem:[#allocation5 + $0x50] sm:$0xf]  ;;  %v3511_v54 = vld [vmem:[#allocation5 + $0x58] sm:$0xf0]  ;;  %v2571_v56 = vor.u32 %v3510_v50, %v2570_v49  ;;  %v2575_v58 = vor.u32 %v3509_v51, %v2572_v52  ;;  %v3741_v61 = vld [vmem:[%s3979_s0] sm:$0xff]  }
  0x1d   :  { %v2579_v59 = vor.u32 %v3511_v54, %v2578_v53  ;;  %v3742_v63 = vunpack.c.l.bf16 %v3741_v61  ;;  %v3743_v1 = vunpack.c.h.bf16 %v3741_v61  ;;  %v2560_v11 = vld [vmem:[#allocation5 + $0x3c] sm:$0xf0]  ;;  %v2566_v12 = vld [vmem:[#allocation5 + $0x38] sm:$0xf]  ;;  %v3508_v13 = vld [vmem:[#allocation5 + $0x40] sm:$0xf0] }
  0x1e   :  { %353 = vmatpush.bf16.msra.mxu1 %v2595_v35  ;;  %367 = vmatpush.bf16.msra.mxu2 %v2599_v36  ;;  %v2567_v15 = vor.u32 %v3508_v13, %v2566_v12  ;;  %v2546_v16 = vld [vmem:[#allocation5 + $0x18] sm:$0xf]  ;;  %v3504_v17 = vld [vmem:[#allocation5 + $0x20] sm:$0xf0]  ;;  %v3503_v18 = vld [vmem:[#allocation5 + $0x1c] sm:$0xf] }
  0x1f   :  { %381 = vmatpush.bf16.msra.mxu3 %v2603_v37  ;;  %v2547_v19 = vor.u32 %v3504_v17, %v2546_v16  ;;  %v2548_v20 = vld [vmem:[#allocation5 + $0x24] sm:$0xf0]  ;;  %v2554_v21 = vld [vmem:[#allocation5 + $0x20] sm:$0xf]  ;;  %v3505_v22 = vld [vmem:[#allocation5 + $0x28] sm:$0xf0] }
  0x20   :  { %172 = vmatpush.bf16.msra.mxu0 %v3495_v7  ;;  %v2558_v7 = vld [vmem:[#allocation5 + $0x30] sm:$0xf]  ;;  %v2551_v23 = vor.u32 %v3503_v18, %v2548_v20  ;;  %v2555_v24 = vor.u32 %v3505_v22, %v2554_v21  ;;  %v2534_v25 = vld [vmem:[#allocation5] sm:$0xf]  ;;  %v3501_v26 = vld [vmem:[#allocation5 + $0x8] sm:$0xf0] }
  0x21   :  { %v3500_v27 = vld [vmem:[#allocation5 + $0x4] sm:$0xf]  ;;  %v2535_v28 = vor.u32 %v3501_v26, %v2534_v25  ;;  %v2536_v29 = vld [vmem:[#allocation5 + $0xc] sm:$0xf0]  ;;  %v2542_v30 = vld [vmem:[#allocation5 + $0x8] sm:$0xf] }
  0x22   :  { %354 = vmatpush.bf16.msra.mxu1 %v2583_v44  ;;  %368 = vmatpush.bf16.msra.mxu2 %v2587_v47  ;;  %v3502_v31 = vld [vmem:[#allocation5 + $0x10] sm:$0xf0]  ;;  %v2539_v32 = vor.u32 %v3500_v27, %v2536_v29  ;;  %v2714_v34 = vld [vmem:[#allocation5 + $0x168] sm:$0xf]  ;;  %v3545_v36 = vld [vmem:[#allocation5 + $0x16c] sm:$0xf] }
  0x23   :  { %382 = vmatpush.bf16.msra.mxu3 %v2591_v48  ;;  %v2543_v33 = vor.u32 %v3502_v31, %v2542_v30  ;;  %v3546_v35 = vld [vmem:[#allocation5 + $0x170] sm:$0xf0]  ;;  %v2716_v38 = vld [vmem:[#allocation5 + $0x174] sm:$0xf0]  ;;  %v2722_v39 = vld [vmem:[#allocation5 + $0x170] sm:$0xf] }
  0x24   :  { %173 = vmatpush.bf16.msra.mxu0 %v3494_v8  ;;  %v3507_v8 = vld [vmem:[#allocation5 + $0x38] sm:$0xf0]  ;;  %v2715_v37 = vor.u32 %v3546_v35, %v2714_v34  ;;  %v2719_v41 = vor.u32 %v3545_v36, %v2716_v38  ;;  %v3759_v44 = vld [vmem:[%s3982_s3] ss:$0 sm:$0xff]  ;;  %v2702_v49 = vld [vmem:[#allocation5 + $0x150] sm:$0xf] }
  0x25   :  { %v3547_v40 = vld [vmem:[#allocation5 + $0x178] sm:$0xf0]  ;;  %v3542_v51 = vld [vmem:[#allocation5 + $0x154] sm:$0xf]  ;;  %v2704_v53 = vld [vmem:[#allocation5 + $0x15c] sm:$0xf0] }
  0x26   :  { %355 = vmatpush.bf16.msra.mxu1 %v2571_v56  ;;  %369 = vmatpush.bf16.msra.mxu2 %v2575_v58  ;;  %v2723_v42 = vor.u32 %v3547_v40, %v2722_v39  ;;  %v3543_v50 = vld [vmem:[#allocation5 + $0x158] sm:$0xf0]  ;;  %v2710_v54 = vld [vmem:[#allocation5 + $0x158] sm:$0xf]  ;;  %v2707_v56 = vor.u32 %v3542_v51, %v2704_v53  ;;  %v2666_v12 = vld [vmem:[#allocation5 + $0x108] sm:$0xf] }
  0x27   :  { %383 = vmatpush.bf16.msra.mxu3 %v2579_v59  ;;  %v2703_v52 = vor.u32 %v3543_v50, %v2702_v49  ;;  %v2690_v58 = vld [vmem:[#allocation5 + $0x138] sm:$0xf]  ;;  %v3540_v59 = vld [vmem:[#allocation5 + $0x140] sm:$0xf0]  ;;  %v3534_v13 = vld [vmem:[#allocation5 + $0x110] sm:$0xf0] }
  0x28   :  { %174 = vmatpush.bf16.msra.mxu0 %v3493_v9  ;;  %v3506_v9 = vld [vmem:[#allocation5 + $0x34] sm:$0xf]  ;;  %v2691_v61 = vor.u32 %v3540_v59, %v2690_v58  ;;  %v2668_v16 = vld [vmem:[#allocation5 + $0x114] sm:$0xf0]  ;;  %v2674_v17 = vld [vmem:[#allocation5 + $0x110] sm:$0xf] }
  0x29   :  { %v2563_v14 = vor.u32 %v3506_v9, %v2560_v11  ;;  %v3538_v9 = vld [vmem:[#allocation5 + $0x130] sm:$0xf0]  ;;  %v3535_v18 = vld [vmem:[#allocation5 + $0x118] sm:$0xf0]  ;;  %v2654_v21 = vld [vmem:[#allocation5 + $0xf0] sm:$0xf] }
  0x2a   :  { %v2675_v20 = vor.u32 %v3535_v18, %v2674_v17  ;;  %v3531_v22 = vld [vmem:[#allocation5 + $0xf8] sm:$0xf0]  ;;  %v2656_v25 = vld [vmem:[#allocation5 + $0xfc] sm:$0xf0]  ;;  %v2662_v26 = vld [vmem:[#allocation5 + $0xf8] sm:$0xf] }
  0x2b   :  { %370 = vmatpush.bf16.msra.mxu2 %v2563_v14  ;;  %384 = vmatpush.bf16.msra.mxu3 %v2567_v15  ;;  %v3533_v14 = vld [vmem:[#allocation5 + $0x10c] sm:$0xf]  ;;  %v2667_v15 = vor.u32 %v3534_v13, %v2666_v12  ;;  %v3532_v27 = vld [vmem:[#allocation5 + $0x100] sm:$0xf0]  ;;  %v2642_v30 = vld [vmem:[#allocation5 + $0xd8] sm:$0xf] }
  0x2c   :  { %175 = vmatpush.bf16.msra.mxu0 %v3492_v10  ;;  %v2559_v10 = vor.u32 %v3507_v8, %v2558_v7  ;;  %v2680_v7 = vld [vmem:[#allocation5 + $0x12c] sm:$0xf0]  ;;  %v2686_v8 = vld [vmem:[#allocation5 + $0x128] sm:$0xf]  ;;  %v2663_v29 = vor.u32 %v3532_v27, %v2662_v26  ;;  %v3528_v31 = vld [vmem:[#allocation5 + $0xe0] sm:$0xf0] }
  0x2d   :  { %v2687_v11 = vor.u32 %v3538_v9, %v2686_v8  ;;  %v2644_v34 = vld [vmem:[#allocation5 + $0xe4] sm:$0xf0]  ;;  %v2650_v35 = vld [vmem:[#allocation5 + $0xe0] sm:$0xf]  ;;  %v3529_v36 = vld [vmem:[#allocation5 + $0xe8] sm:$0xf0] }
  0x2e   :  { %356 = vmatpush.bf16.msra.mxu1 %v2559_v10  ;;  %v2651_v38 = vor.u32 %v3529_v36, %v2650_v35  ;;  %v214_v39 = vld [vmem:[#allocation7] sm:$0x7]  ;;  %v2810_v50 = vld [vmem:[#allocation5 + $0x228] sm:$0xf]  ;;  %v3570_v51 = vld [vmem:[#allocation5 + $0x230] sm:$0xf0] }
  0x2f   :  { %371 = vmatpush.bf16.msra.mxu2 %v2551_v23  ;;  %385 = vmatpush.bf16.msra.mxu3 %v2555_v24  ;;  %v3530_v23 = vld [vmem:[#allocation5 + $0xf4] sm:$0xf]  ;;  %v2655_v24 = vor.u32 %v3531_v22, %v2654_v21  ;;  %v2630_v40 = vld [vmem:[#allocation5 + $0xc0] sm:$0xf]  ;;  %v217_v49 = vperm.slane %v214_v39, 0  ;;  %s3917_s3 = smov [#allocation8]  }
  0x30   :  { %580 = vmatpush.bf16.msrb.mxu0 %v2715_v37  ;;  %v2798_v26 = vld [vmem:[#allocation5 + $0x210] sm:$0xf]  ;;  %v3567_v27 = vld [vmem:[#allocation5 + $0x218] sm:$0xf0]  ;;  %v2786_v35 = vld [vmem:[#allocation5 + $0x1f8] sm:$0xf] }
  0x31   :  { %v3564_v36 = vld [vmem:[#allocation5 + $0x200] sm:$0xf0]  ;;  %s2484_s21 = sshll.u32 %s3917_s3, 4  ;;  %s2485_s21 = int_to_ptr.vmem [resolvable:$true] %s2484_s21 }
  0x32   :  { %357 = vmatpush.bf16.msra.mxu1 %v2547_v19  ;;  %v2671_v19 = vor.u32 %v3533_v14, %v2668_v16 }
  0x33   :  { %372 = vmatpush.bf16.msra.mxu2 %v2539_v32  ;;  %386 = vmatpush.bf16.msra.mxu3 %v2543_v33  ;;  %v3527_v32 = vld [vmem:[#allocation5 + $0xdc] sm:$0xf]  ;;  %v2643_v33 = vor.u32 %v3528_v31, %v2642_v30  ;;  %v2800_v30 = vld [vmem:[#allocation5 + $0x21c] sm:$0xf0]  ;;  %v2806_v31 = vld [vmem:[#allocation5 + $0x218] sm:$0xf] }
  0x34   :  { %581 = vmatpush.bf16.msrb.mxu0 %v2703_v52  ;;  %v2647_v37 = vor.u32 %v3527_v32, %v2644_v34  ;;  %v3569_v52 = vld [vmem:[#allocation5 + $0x22c] sm:$0xf]  ;;  %v3568_v32 = vld [vmem:[#allocation5 + $0x220] sm:$0xf0] }
  0x35   :  { %v2807_v34 = vor.u32 %v3568_v32, %v2806_v31 }
  0x36   :  { %358 = vmatpush.bf16.msra.mxu1 %v2535_v28  ;;  %v2659_v28 = vor.u32 %v3530_v23, %v2656_v25 }
  0x37   :  { %608 = vmatpush.bf16.msrb.mxu2 %v2723_v42  ;;  %v3524_v42 = vld [vmem:[#allocation5 + $0xc4] sm:$0xf] }
  0x38   :  { %582 = vmatpush.bf16.msrb.mxu0 %v2691_v61 }
  0x3a   :  { %594 = vmatpush.bf16.msrb.mxu1 %v2719_v41  ;;  %v3525_v41 = vld [vmem:[#allocation5 + $0xc8] sm:$0xf0] }
  0x3e   :  { %595 = vmatpush.bf16.msrb.mxu1 %v2707_v56  ;;  %v2818_v56 = vld [vmem:[#allocation5 + $0x230] sm:$0xf] }
  0x83   :  { %v78_v55 = vpop.permute.xlu0 %77 }
  0x84   :  { %v83_v60 = vperm.slane %v78_v55, %v82_v57  ;;  %v3544_v55 = vld [vmem:[#allocation5 + $0x160] sm:$0xf0] }
  0x86   :  { %v95_v0 = vunpack.c.l.bf16 %v83_v60  ;;  %v3539_v60 = vld [vmem:[#allocation5 + $0x13c] sm:$0xf] }
  0x88   :  { %v97_v4 = vmul.f32 %v3742_v63, %v95_v0  ;;  %v2698_v63 = vld [vmem:[#allocation5 + $0x140] sm:$0xf] }
  0x8b   :  { %v87_v62 = vpop.permute.xlu0 %86 }
  0x8c   :  { %v92_v2 = vperm.slane %v87_v62, %v82_v57  ;;  %v2711_v57 = vor.u32 %v3544_v55, %v2710_v54  ;;  %v2692_v62 = vld [vmem:[#allocation5 + $0x144] sm:$0xf0]  ;;  %v2811_v54 = vor.u32 %v3570_v51, %v2810_v50  ;;  %v2812_v55 = vld [vmem:[#allocation5 + $0x234] sm:$0xf0]  ;;  %v3562_v50 = vld [vmem:[#allocation5 + $0x1f0] sm:$0xf0] }
  0x8d   :  { %v2695_v0 = vor.u32 %v3539_v60, %v2692_v62  ;;  %v2815_v59 = vor.u32 %v3569_v52, %v2812_v55  ;;  %v3557_v55 = vld [vmem:[#allocation5 + $0x1cc] sm:$0xf] }
  0x8e   :  { %v96_v3 = vunpack.c.l.bf16 %v92_v2  ;;  %609 = vmatpush.bf16.msrb.mxu2 %v2711_v57  ;;  %v3571_v57 = vld [vmem:[#allocation5 + $0x238] sm:$0xf0]  ;;  %809 = vmatpush.bf16.msrb.mxu3 %v2811_v54  ;;  %v3558_v54 = vld [vmem:[#allocation5 + $0x1d0] sm:$0xf0] }
  0x8f   :  { %596 = vmatpush.bf16.msrb.mxu1 %v2695_v0  ;;  %v2819_v60 = vor.u32 %v3571_v57, %v2818_v56  ;;  %v218_v0 = vperm.slane %v214_v39, 1  ;;  %v2764_v57 = vld [vmem:[#allocation5 + $0x1d4] sm:$0xf0] }
  0x90   :  { %v98_v5 = vmul.f32 %v3743_v1, %v96_v3  ;;  %v3541_v1 = vld [vmem:[#allocation5 + $0x148] sm:$0xf0]  ;;  %v2678_v3 = vld [vmem:[#allocation5 + $0x120] sm:$0xf] }
  0x91   :  { %v2699_v2 = vor.u32 %v3541_v1, %v2698_v63 }
  0x92   :  { %v99_v6 = vpack.c.bf16 %v98_v5, %v97_v4  ;;  %v3537_v4 = vld [vmem:[#allocation5 + $0x128] sm:$0xf0]  ;;  %v3536_v5 = vld [vmem:[#allocation5 + $0x124] sm:$0xf] }
  0x93   :  { %610 = vmatpush.bf16.msrb.mxu2 %v2699_v2  ;;  %v2683_v10 = vor.u32 %v3536_v5, %v2680_v7  ;;  %v219_v7 = vperm.slane %v214_v39, 2  ;;  %v2788_v39 = vld [vmem:[#allocation5 + $0x204] sm:$0xf0] }
  0x94   :  { %176 = vmatmul.bf16.vlgmr.msra.gmra.mxu0 %v99_v6  ;;  %v2679_v6 = vor.u32 %v3537_v4, %v2678_v3 }
  0x95   :  { %597 = vmatpush.bf16.msrb.mxu1 %v2683_v10 }
  0x96   :  { %583 = vmatpush.bf16.msrb.mxu0 %v2679_v6 }
  0x97   :  { %611 = vmatpush.bf16.msrb.mxu2 %v2687_v11 }
  0x99   :  { %598 = vmatpush.bf16.msrb.mxu1 %v2671_v19 }
  0x9a   :  { %584 = vmatpush.bf16.msrb.mxu0 %v2667_v15 }
  0x9b   :  { %612 = vmatpush.bf16.msrb.mxu2 %v2675_v20 }
  0x9d   :  { %599 = vmatpush.bf16.msrb.mxu1 %v2659_v28  ;;  %v3566_v28 = vld [vmem:[#allocation5 + $0x214] sm:$0xf] }
  0x9e   :  { %585 = vmatpush.bf16.msrb.mxu0 %v2655_v24 }
  0x9f   :  { %613 = vmatpush.bf16.msrb.mxu2 %v2663_v29  ;;  %v2799_v29 = vor.u32 %v3567_v27, %v2798_v26 }
  0xa1   :  { %600 = vmatpush.bf16.msrb.mxu1 %v2647_v37  ;;  %810 = vmatpush.bf16.msrb.mxu3 %v2799_v29  ;;  %v3563_v37 = vld [vmem:[#allocation5 + $0x1fc] sm:$0xf] }
  0xa2   :  { %586 = vmatpush.bf16.msrb.mxu0 %v2643_v33  ;;  %v2803_v33 = vor.u32 %v3566_v28, %v2800_v30 }
  0xa3   :  { %614 = vmatpush.bf16.msrb.mxu2 %v2651_v38  ;;  %v2787_v38 = vor.u32 %v3564_v36, %v2786_v35 }
  0xa5   :  { %811 = vmatpush.bf16.msrb.mxu3 %v2787_v38 }
 0x111   :  { %v177_v43 = vpop.f32.mrf.mxu0 }
 0x112   :  { %v178_v46 = vadd.f32 %v3759_v44, %v177_v43  ;;  %v2631_v43 = vor.u32 %v3525_v41, %v2630_v40  ;;  %v2794_v40 = vld [vmem:[#allocation5 + $0x200] sm:$0xf]  ;;  %v2791_v41 = vor.u32 %v3563_v37, %v2788_v39 }
 0x114   :  { %587 = vmatpush.bf16.msrb.mxu0 %v2631_v43 }
 0x118   :  { %823 = vmatpush.bf16.msra.mxu0 %v2815_v59  ;;  %v3559_v59 = vld [vmem:[#allocation5 + $0x1d8] sm:$0xf0] }
 0x119   :  { %v179_v45 = vpop.f32.mrf.mxu0 }
 0x11a   :  { %v180_v47 = vadd.f32 %v3759_v44, %v179_v45  ;;  %v2632_v44 = vld [vmem:[#allocation5 + $0xcc] sm:$0xf0]  ;;  %v2638_v45 = vld [vmem:[#allocation5 + $0xc8] sm:$0xf] }
 0x11c   :  { %v215_v48 = vpack.c.bf16 %v180_v47, %v178_v46  ;;  %v3526_v46 = vld [vmem:[#allocation5 + $0xd0] sm:$0xf0]  ;;  %v2635_v47 = vor.u32 %v3524_v42, %v2632_v44  ;;  %824 = vmatpush.bf16.msra.mxu0 %v2803_v33  ;;  %v3565_v42 = vld [vmem:[#allocation5 + $0x208] sm:$0xf0]  ;;  %v2774_v44 = vld [vmem:[#allocation5 + $0x1e0] sm:$0xf] }
 0x11d   :  { %v2795_v43 = vor.u32 %v3565_v42, %v2794_v40 }
 0x11e   :  { %359 = vmatmul.bf16.vlgmr.msra.gmra.mxu1 %v215_v48  ;;  %373 = vmatmul.bf16.vlgmr.msra.gmra.mxu2 %v215_v48 }
 0x11f   :  { %387 = vmatmul.bf16.vlgmr.msra.gmra.mxu3 %v215_v48  ;;  %v2639_v48 = vor.u32 %v3526_v46, %v2638_v45  ;;  %601 = vmatpush.bf16.msrb.mxu1 %v2635_v47  ;;  %v3561_v45 = vld [vmem:[#allocation5 + $0x1e8] sm:$0xf0]  ;;  %v3560_v46 = vld [vmem:[#allocation5 + $0x1e4] sm:$0xf] }
 0x120   :  { %825 = vmatpush.bf16.msra.mxu0 %v2791_v41  ;;  %v2775_v47 = vor.u32 %v3561_v45, %v2774_v44 }
 0x121   :  { %615 = vmatpush.bf16.msrb.mxu2 %v2639_v48  ;;  %v2776_v48 = vld [vmem:[#allocation5 + $0x1ec] sm:$0xf0] }
 0x122   :  { %v2779_v51 = vor.u32 %v3560_v46, %v2776_v48  ;;  %812 = vmatpush.bf16.msrb.mxu3 %v2775_v47 }
 0x123   :  { %837 = vmatpush.bf16.msra.mxu1 %v2819_v60  ;;  %v2767_v60 = vor.u32 %v3557_v55, %v2764_v57 }
 0x124   :  { %826 = vmatpush.bf16.msra.mxu0 %v2779_v51 }
 0x127   :  { %838 = vmatpush.bf16.msra.mxu1 %v2807_v34 }
 0x128   :  { %827 = vmatpush.bf16.msra.mxu0 %v2767_v60  ;;  %v3593_v60 = vld [vmem:[#allocation5 + $0x2ec] sm:$0xf] }
 0x12b   :  { %839 = vmatpush.bf16.msra.mxu1 %v2795_v43 }
 0x19b   :  { %v360_v53 = vpop.f32.mrf.mxu1 }
 0x19c   :  { %v361_v58 = vadd.f32 %v360_v53, %v217_v49  ;;  %v2762_v53 = vld [vmem:[#allocation5 + $0x1c8] sm:$0xf] }
 0x19d   :  { %v2763_v56 = vor.u32 %v3558_v54, %v2762_v53 }
 0x19e   :  { %v393_v61 = vmul.f32 0.5, %v361_v58  ;;  %v2770_v58 = vld [vmem:[#allocation5 + $0x1d0] sm:$0xf] }
 0x19f   :  { %813 = vmatpush.bf16.msrb.mxu3 %v2763_v56 }
 0x1a0   :  { %3760 = vtanh.f32 %v393_v61  ;;  %v2771_v61 = vor.u32 %v3559_v59, %v2770_v58  ;;  %v2906_v58 = vld [vmem:[#allocation5 + $0x2e8] sm:$0xf]  ;;  %v3594_v59 = vld [vmem:[#allocation5 + $0x2f0] sm:$0xf0] }
 0x1a1   :  { %v374_v62 = vpop.f32.mrf.mxu2 }
 0x1a2   :  { %v388_v63 = vpop.f32.mrf.mxu3  ;;  %v375_v5 = vadd.f32 %v374_v62, %v218_v0  ;;  %v2750_v62 = vld [vmem:[#allocation5 + $0x1b0] sm:$0xf] }
 0x1a3   :  { %v362_v1 = vpop.f32.mrf.mxu1  ;;  %v389_v13 = vadd.f32 %v388_v63, %v219_v7  ;;  %v3555_v63 = vld [vmem:[#allocation5 + $0x1b8] sm:$0xf0] }
 0x1a4   :  { %v363_v2 = vadd.f32 %v362_v1, %v217_v49  ;;  %v401_v10 = vmax.f32 %v375_v5, 0.0  ;;  %v2782_v49 = vld [vmem:[#allocation5 + $0x1e8] sm:$0xf]  ;;  %v2751_v1 = vor.u32 %v3555_v63, %v2750_v62  ;;  %v2908_v62 = vld [vmem:[#allocation5 + $0x2f4] sm:$0xf0] }
 0x1a5   :  { %v2783_v52 = vor.u32 %v3562_v50, %v2782_v49  ;;  %v2914_v63 = vld [vmem:[#allocation5 + $0x2f0] sm:$0xf] }
 0x1a6   :  { %v3761_v3 = vpop.eup %3760  ;;  %v394_v4 = vmul.f32 0.5, %v363_v2  ;;  %v403_v16 = vsub.f32 %v401_v10, %v389_v13  ;;  %v2752_v2 = vld [vmem:[#allocation5 + $0x1bc] sm:$0xf0]  ;;  %814 = vmatpush.bf16.msrb.mxu3 %v2751_v1  ;;  %v2911_v1 = vor.u32 %v3593_v60, %v2908_v62  ;;  %v2830_v62 = vld [vmem:[#allocation5 + $0x248] sm:$0xf] }
 0x1a7   :  { %v397_v6 = vadd.f32 1.0, %v3761_v3  ;;  %840 = vmatpush.bf16.msra.mxu1 %v2783_v52  ;;  %v2758_v3 = vld [vmem:[#allocation5 + $0x1b8] sm:$0xf] }
 0x1a8   :  { %3762 = vtanh.f32 %v394_v4  ;;  %v3556_v4 = vld [vmem:[#allocation5 + $0x1c0] sm:$0xf0] }
 0x1a9   :  { %v376_v8 = vpop.f32.mrf.mxu2  ;;  %v399_v12 = vmul.f32 0.5, %v397_v6  ;;  %v2759_v6 = vor.u32 %v3556_v4, %v2758_v3  ;;  %v2894_v3 = vld [vmem:[#allocation5 + $0x2d0] sm:$0xf]  ;;  %v3591_v4 = vld [vmem:[#allocation5 + $0x2d8] sm:$0xf0] }
 0x1aa   :  { %v377_v9 = vadd.f32 %v376_v8, %v218_v0  ;;  %v390_v11 = vpop.f32.mrf.mxu3  ;;  %v3554_v0 = vld [vmem:[#allocation5 + $0x1b4] sm:$0xf]  ;;  %v3552_v8 = vld [vmem:[#allocation5 + $0x1a0] sm:$0xf0] }
 0x1ab   :  { %v391_v18 = vadd.f32 %v390_v11, %v219_v7  ;;  %v405_v19 = vmul.f32 %v403_v16, %v399_v12  ;;  %841 = vmatpush.bf16.msra.mxu1 %v2771_v61  ;;  %v2755_v5 = vor.u32 %v3554_v0, %v2752_v2  ;;  %v2738_v7 = vld [vmem:[#allocation5 + $0x198] sm:$0xf]  ;;  %v2740_v11 = vld [vmem:[#allocation5 + $0x1a4] sm:$0xf0]  ;;  %v2746_v12 = vld [vmem:[#allocation5 + $0x1a0] sm:$0xf]  ;;  %v2907_v61 = vor.u32 %v3594_v59, %v2906_v58 }
 0x1ac   :  { %v402_v14 = vmax.f32 %v377_v9, 0.0  ;;  %v3551_v9 = vld [vmem:[#allocation5 + $0x19c] sm:$0xf]  ;;  %v2739_v10 = vor.u32 %v3552_v8, %v2738_v7  ;;  %v443_v16 = vld [vmem:[#allocation7 + $0x3] sm:$0x7] }
 0x1ad   :  { %v407_v23 = vadd.f32 %v405_v19, %v389_v13  ;;  %828 = vmatpush.bf16.msra.mxu0 %v2755_v5  ;;  %v3553_v13 = vld [vmem:[#allocation5 + $0x1a8] sm:$0xf0]  ;;  %v3548_v19 = vld [vmem:[#allocation5 + $0x184] sm:$0xf]  ;;  %v446_v26 = vperm.slane %v443_v16, 0  ;;  %v447_v34 = vperm.slane %v443_v16, 1  ;;  %1038 = vmatpush.bf16.msra.mxu2 %v2907_v61 }
 0x1ae   :  { %v3763_v15 = vpop.eup %3762  ;;  %v404_v21 = vsub.f32 %v402_v14, %v391_v18  ;;  %v2743_v14 = vor.u32 %v3551_v9, %v2740_v11  ;;  %815 = vmatpush.bf16.msrb.mxu3 %v2739_v10  ;;  %v448_v37 = vperm.slane %v443_v16, 2  ;;  %v3595_v0 = vld [vmem:[#allocation5 + $0x2f8] sm:$0xf0]  ;;  %v3590_v5 = vld [vmem:[#allocation5 + $0x2d4] sm:$0xf] }
 0x1af   :  { %v398_v17 = vadd.f32 1.0, %v3763_v15  ;;  %842 = vmatpush.bf16.msra.mxu1 %v2759_v6  ;;  %v2747_v15 = vor.u32 %v3553_v13, %v2746_v12  ;;  %v2915_v2 = vor.u32 %v3595_v0, %v2914_v63  ;;  %v2895_v6 = vor.u32 %v3591_v4, %v2894_v3  ;;  %v2896_v7 = vld [vmem:[#allocation5 + $0x2dc] sm:$0xf0]  ;;  %v2902_v8 = vld [vmem:[#allocation5 + $0x2d8] sm:$0xf] }
 0x1b0   :  { %v3592_v9 = vld [vmem:[#allocation5 + $0x2e0] sm:$0xf0]  ;;  %v2899_v10 = vor.u32 %v3590_v5, %v2896_v7  ;;  %v2882_v12 = vld [vmem:[#allocation5 + $0x2b8] sm:$0xf]  ;;  %v2884_v16 = vld [vmem:[#allocation5 + $0x2c4] sm:$0xf0] }
 0x1b1   :  { %v400_v20 = vmul.f32 0.5, %v398_v17  ;;  %829 = vmatpush.bf16.msra.mxu0 %v2743_v14  ;;  %v2726_v17 = vld [vmem:[#allocation5 + $0x180] sm:$0xf]  ;;  %v2903_v11 = vor.u32 %v3592_v9, %v2902_v8  ;;  %1039 = vmatpush.bf16.msra.mxu2 %v2895_v6  ;;  %v3588_v13 = vld [vmem:[#allocation5 + $0x2c0] sm:$0xf0] }
 0x1b2   :  { %v3587_v14 = vld [vmem:[#allocation5 + $0x2bc] sm:$0xf]  ;;  %v3573_v58 = vld [vmem:[#allocation5 + $0x248] sm:$0xf0]  ;;  %v3572_v59 = vld [vmem:[#allocation5 + $0x244] sm:$0xf] }
 0x1b3   :  { %v406_v22 = vmul.f32 %v404_v21, %v400_v20  ;;  %843 = vmatpush.bf16.msra.mxu1 %v2747_v15  ;;  %v2728_v21 = vld [vmem:[#allocation5 + $0x18c] sm:$0xf0]  ;;  %v2883_v15 = vor.u32 %v3588_v13, %v2882_v12  ;;  %v3574_v63 = vld [vmem:[#allocation5 + $0x250] sm:$0xf0] }
 0x1b4   :  { %v2824_v61 = vld [vmem:[#allocation5 + $0x24c] sm:$0xf0] }
 0x1b5   :  { %v408_v24 = vadd.f32 %v406_v22, %v391_v18  ;;  %v3549_v18 = vld [vmem:[#allocation5 + $0x188] sm:$0xf0]  ;;  %v2734_v22 = vld [vmem:[#allocation5 + $0x188] sm:$0xf]  ;;  %1040 = vmatpush.bf16.msra.mxu2 %v2883_v15  ;;  %v2827_v0 = vor.u32 %v3572_v59, %v2824_v61 }
 0x1b6   :  { %v2727_v20 = vor.u32 %v3549_v18, %v2726_v17  ;;  %v2890_v17 = vld [vmem:[#allocation5 + $0x2c0] sm:$0xf]  ;;  %v3589_v18 = vld [vmem:[#allocation5 + $0x2c8] sm:$0xf0] }
 0x1b7   :  { %v444_v25 = vpack.c.bf16 %v408_v24, %v407_v23  ;;  %v3550_v23 = vld [vmem:[#allocation5 + $0x190] sm:$0xf0]  ;;  %v2731_v24 = vor.u32 %v3548_v19, %v2728_v21  ;;  %v2887_v19 = vor.u32 %v3587_v14, %v2884_v16  ;;  %v2870_v21 = vld [vmem:[#allocation5 + $0x2a0] sm:$0xf]  ;;  %v3613_v59 = vld [vmem:[#allocation5 + $0x388] sm:$0xf0] }
 0x1b8   :  { %816 = vmatpush.bf16.msrb.mxu3 %v2727_v20  ;;  %v2891_v20 = vor.u32 %v3589_v18, %v2890_v17 }
 0x1b9   :  { %588 = vmatmul.bf16.vlgmr.msrb.gmra.mxu0 %v444_v25  ;;  %602 = vmatmul.bf16.vlgmr.msrb.gmra.mxu1 %v444_v25 }
 0x1ba   :  { %616 = vmatmul.bf16.vlgmr.msrb.gmra.mxu2 %v444_v25  ;;  %v2735_v25 = vor.u32 %v3550_v23, %v2734_v22  ;;  %830 = vmatpush.bf16.msra.mxu0 %v2731_v24  ;;  %v3585_v22 = vld [vmem:[#allocation5 + $0x2a8] sm:$0xf0]  ;;  %v3584_v23 = vld [vmem:[#allocation5 + $0x2a4] sm:$0xf] }
 0x1bb   :  { %v2871_v24 = vor.u32 %v3585_v22, %v2870_v21 }
 0x1bc   :  { %844 = vmatpush.bf16.msra.mxu1 %v2735_v25  ;;  %1052 = vmatpush.bf16.msra.mxu3 %v2911_v1  ;;  %v2872_v25 = vld [vmem:[#allocation5 + $0x2ac] sm:$0xf0]  ;;  %v2831_v1 = vor.u32 %v3574_v63, %v2830_v62  ;;  %v2966_v62 = vld [vmem:[#allocation5 + $0x360] sm:$0xf]  ;;  %v3609_v63 = vld [vmem:[#allocation5 + $0x368] sm:$0xf0] }
 0x1bd   :  { %1041 = vmatpush.bf16.msra.mxu2 %v2871_v24 }
 0x1be   :  { %1066 = vmatpush.bf16.msrb.mxu0 %v2915_v2  ;;  %v672_v2 = vld [vmem:[#allocation7 + $0x6] sm:$0x7] }
 0x1bf   :  { %v675_v3 = vperm.slane %v672_v2, 0  ;;  %v676_v9 = vperm.slane %v672_v2, 1  ;;  %v677_v16 = vperm.slane %v672_v2, 2  ;;  %v2968_v2 = vld [vmem:[#allocation5 + $0x36c] sm:$0xf0] }
 0x1c0   :  { %1053 = vmatpush.bf16.msra.mxu3 %v2899_v10 }
 0x1c2   :  { %1067 = vmatpush.bf16.msrb.mxu0 %v2903_v11 }
 0x1c4   :  { %1054 = vmatpush.bf16.msra.mxu3 %v2887_v19 }
 0x1c6   :  { %1068 = vmatpush.bf16.msrb.mxu0 %v2891_v20 }
 0x236   :  { %v589_v27 = vpop.f32.mrf.mxu0  ;;  %v603_v30 = vpop.f32.mrf.mxu1 }
 0x237   :  { %v590_v28 = vadd.f32 %v589_v27, %v446_v26  ;;  %v604_v40 = vadd.f32 %v603_v30, %v447_v34  ;;  %v3586_v27 = vld [vmem:[#allocation5 + $0x2b0] sm:$0xf0]  ;;  %v2858_v30 = vld [vmem:[#allocation5 + $0x288] sm:$0xf] }
 0x239   :  { %v622_v29 = vmul.f32 0.5, %v590_v28  ;;  %v630_v45 = vmax.f32 %v604_v40, 0.0  ;;  %v2875_v28 = vor.u32 %v3584_v23, %v2872_v25  ;;  %v3579_v40 = vld [vmem:[#allocation5 + $0x278] sm:$0xf0] }
 0x23b   :  { %3764 = vtanh.f32 %v622_v29  ;;  %1055 = vmatpush.bf16.msra.mxu3 %v2875_v28 }
 0x23d   :  { %v617_v31 = vpop.f32.mrf.mxu2 }
 0x23e   :  { %v591_v32 = vpop.f32.mrf.mxu0  ;;  %v605_v38 = vpop.f32.mrf.mxu1  ;;  %v618_v42 = vadd.f32 %v617_v31, %v448_v37  ;;  %v3582_v31 = vld [vmem:[#allocation5 + $0x290] sm:$0xf0] }
 0x23f   :  { %v592_v33 = vadd.f32 %v591_v32, %v446_v26  ;;  %v606_v43 = vadd.f32 %v605_v38, %v447_v34  ;;  %v2878_v26 = vld [vmem:[#allocation5 + $0x2a8] sm:$0xf]  ;;  %v3581_v32 = vld [vmem:[#allocation5 + $0x28c] sm:$0xf]  ;;  %v2860_v34 = vld [vmem:[#allocation5 + $0x294] sm:$0xf0] }
 0x240   :  { %v632_v48 = vsub.f32 %v630_v45, %v618_v42  ;;  %v2879_v29 = vor.u32 %v3586_v27, %v2878_v26  ;;  %v3580_v45 = vld [vmem:[#allocation5 + $0x280] sm:$0xf0] }
 0x241   :  { %v3765_v35 = vpop.eup %3764  ;;  %v623_v36 = vmul.f32 0.5, %v592_v33  ;;  %v631_v50 = vmax.f32 %v606_v43, 0.0  ;;  %v2859_v33 = vor.u32 %v3582_v31, %v2858_v30  ;;  %v2848_v43 = vld [vmem:[#allocation5 + $0x27c] sm:$0xf0] }
 0x242   :  { %v626_v39 = vadd.f32 1.0, %v3765_v35  ;;  %1069 = vmatpush.bf16.msrb.mxu0 %v2879_v29  ;;  %v2866_v35 = vld [vmem:[#allocation5 + $0x290] sm:$0xf] }
 0x243   :  { %3766 = vtanh.f32 %v623_v36  ;;  %v3583_v36 = vld [vmem:[#allocation5 + $0x298] sm:$0xf0]  ;;  %1042 = vmatpush.bf16.msra.mxu2 %v2859_v33 }
 0x244   :  { %v628_v44 = vmul.f32 0.5, %v626_v39  ;;  %v2867_v38 = vor.u32 %v3583_v36, %v2866_v35  ;;  %v2846_v39 = vld [vmem:[#allocation5 + $0x270] sm:$0xf]  ;;  %v3002_v35 = vld [vmem:[#allocation5 + $0x3a8] sm:$0xf] }
 0x245   :  { %v619_v41 = vpop.f32.mrf.mxu2  ;;  %v3618_v36 = vld [vmem:[#allocation5 + $0x3b0] sm:$0xf0] }
 0x246   :  { %v620_v46 = vadd.f32 %v619_v41, %v448_v37  ;;  %v634_v51 = vmul.f32 %v632_v48, %v628_v44  ;;  %v2863_v37 = vor.u32 %v3581_v32, %v2860_v34  ;;  %1070 = vmatpush.bf16.msrb.mxu0 %v2867_v38  ;;  %v3578_v41 = vld [vmem:[#allocation5 + $0x274] sm:$0xf]  ;;  %v2854_v44 = vld [vmem:[#allocation5 + $0x278] sm:$0xf]  ;;  %v3003_v38 = vor.u32 %v3618_v36, %v3002_v35  ;;  %v3597_v35 = vld [vmem:[#allocation5 + $0x308] sm:$0xf0] }
 0x247   :  { %v2834_v48 = vld [vmem:[#allocation5 + $0x258] sm:$0xf]  ;;  %v3596_v36 = vld [vmem:[#allocation5 + $0x304] sm:$0xf] }
 0x248   :  { %v633_v53 = vsub.f32 %v631_v50, %v620_v46  ;;  %v636_v55 = vadd.f32 %v634_v51, %v618_v42  ;;  %1056 = vmatpush.bf16.msra.mxu3 %v2863_v37  ;;  %v2847_v42 = vor.u32 %v3579_v40, %v2846_v39  ;;  %v3575_v50 = vld [vmem:[#allocation5 + $0x25c] sm:$0xf]  ;;  %v3617_v37 = vld [vmem:[#allocation5 + $0x3ac] sm:$0xf]  ;;  %v3004_v39 = vld [vmem:[#allocation5 + $0x3b4] sm:$0xf0]  ;;  %1267 = vmatpush.bf16.msrb.mxu1 %v3003_v38 }
 0x249   :  { %v3767_v47 = vpop.eup %3766  ;;  %v3010_v40 = vld [vmem:[#allocation5 + $0x3b0] sm:$0xf] }
 0x24a   :  { %v627_v49 = vadd.f32 1.0, %v3767_v47  ;;  %v2855_v47 = vor.u32 %v3580_v45, %v2854_v44  ;;  %1043 = vmatpush.bf16.msra.mxu2 %v2847_v42  ;;  %v3007_v42 = vor.u32 %v3617_v37, %v3004_v39  ;;  %v2990_v44 = vld [vmem:[#allocation5 + $0x390] sm:$0xf]  ;;  %v3615_v45 = vld [vmem:[#allocation5 + $0x398] sm:$0xf0] }
 0x24b   :  { %v2920_v38 = vld [vmem:[#allocation5 + $0x30c] sm:$0xf0]  ;;  %v2926_v39 = vld [vmem:[#allocation5 + $0x308] sm:$0xf] }
 0x24c   :  { %v629_v52 = vmul.f32 0.5, %v627_v49  ;;  %1071 = vmatpush.bf16.msrb.mxu0 %v2855_v47  ;;  %v3576_v49 = vld [vmem:[#allocation5 + $0x260] sm:$0xf0]  ;;  %v2991_v47 = vor.u32 %v3615_v45, %v2990_v44  ;;  %v3098_v45 = vld [vmem:[#allocation5 + $0x468] sm:$0xf] }
 0x24d   :  { %v2835_v51 = vor.u32 %v3576_v49, %v2834_v48  ;;  %v2992_v48 = vld [vmem:[#allocation5 + $0x39c] sm:$0xf0]  ;;  %v2998_v49 = vld [vmem:[#allocation5 + $0x398] sm:$0xf] }
 0x24e   :  { %v635_v54 = vmul.f32 %v633_v53, %v629_v52  ;;  %v2836_v52 = vld [vmem:[#allocation5 + $0x264] sm:$0xf0]  ;;  %v2842_v53 = vld [vmem:[#allocation5 + $0x260] sm:$0xf]  ;;  %1268 = vmatpush.bf16.msrb.mxu1 %v2991_v47  ;;  %v3641_v47 = vld [vmem:[#allocation5 + $0x46c] sm:$0xf] }
 0x24f   :  { %1044 = vmatpush.bf16.msra.mxu2 %v2835_v51 }
 0x250   :  { %v637_v56 = vadd.f32 %v635_v54, %v620_v46  ;;  %v2851_v46 = vor.u32 %v3578_v41, %v2848_v43  ;;  %v3577_v54 = vld [vmem:[#allocation5 + $0x268] sm:$0xf0]  ;;  %v3619_v41 = vld [vmem:[#allocation5 + $0x3b8] sm:$0xf0] }
 0x251   :  { %v3011_v43 = vor.u32 %v3619_v41, %v3010_v40  ;;  %v3598_v40 = vld [vmem:[#allocation5 + $0x310] sm:$0xf0]  ;;  %v2923_v41 = vor.u32 %v3596_v36, %v2920_v38 }
 0x252   :  { %v673_v57 = vpack.c.bf16 %v637_v56, %v636_v55  ;;  %1057 = vmatpush.bf16.msra.mxu3 %v2851_v46  ;;  %v2839_v55 = vor.u32 %v3575_v50, %v2836_v52  ;;  %v2843_v56 = vor.u32 %v3577_v54, %v2842_v53  ;;  %v3614_v46 = vld [vmem:[#allocation5 + $0x394] sm:$0xf]  ;;  %v3616_v50 = vld [vmem:[#allocation5 + $0x3a0] sm:$0xf0]  ;;  %v2978_v53 = vld [vmem:[#allocation5 + $0x378] sm:$0xf] }
 0x253   :  { %v2995_v51 = vor.u32 %v3614_v46, %v2992_v48  ;;  %v2999_v52 = vor.u32 %v3616_v50, %v2998_v49  ;;  %v3612_v54 = vld [vmem:[#allocation5 + $0x380] sm:$0xf0]  ;;  %v3642_v46 = vld [vmem:[#allocation5 + $0x470] sm:$0xf0]  ;;  %v3100_v50 = vld [vmem:[#allocation5 + $0x474] sm:$0xf0] }
 0x254   :  { %817 = vmatmul.bf16.vlgmr.msrb.gmra.mxu3 %v673_v57  ;;  %831 = vmatmul.bf16.vlgmr.msra.gmra.mxu0 %v673_v57  ;;  %v3099_v49 = vor.u32 %v3642_v46, %v3098_v45  ;;  %v3634_v45 = vld [vmem:[#allocation5 + $0x430] sm:$0xf0] }
 0x255   :  { %845 = vmatmul.bf16.vlgmr.msra.gmra.mxu1 %v673_v57  ;;  %1072 = vmatpush.bf16.msrb.mxu0 %v2843_v56  ;;  %v2822_v57 = vld [vmem:[#allocation5 + $0x240] sm:$0xf]  ;;  %v2979_v56 = vor.u32 %v3612_v54, %v2978_v53 }
 0x256   :  { %1058 = vmatpush.bf16.msra.mxu3 %v2839_v55  ;;  %v2823_v60 = vor.u32 %v3573_v58, %v2822_v57  ;;  %v3611_v55 = vld [vmem:[#allocation5 + $0x37c] sm:$0xf]  ;;  %v2980_v57 = vld [vmem:[#allocation5 + $0x384] sm:$0xf0]  ;;  %v2986_v58 = vld [vmem:[#allocation5 + $0x380] sm:$0xf] }
 0x257   :  { %v2987_v61 = vor.u32 %v3613_v59, %v2986_v58  ;;  %1269 = vmatpush.bf16.msrb.mxu1 %v2979_v56 }
 0x258   :  { %1045 = vmatpush.bf16.msra.mxu2 %v2823_v60  ;;  %v2983_v60 = vor.u32 %v3611_v55, %v2980_v57  ;;  %v3103_v55 = vor.u32 %v3641_v47, %v3100_v50  ;;  %v3629_v50 = vld [vmem:[#allocation5 + $0x40c] sm:$0xf] }
 0x259   :  { %1073 = vmatpush.bf16.msrb.mxu0 %v2831_v1  ;;  %v2967_v1 = vor.u32 %v3609_v63, %v2966_v62 }
 0x25a   :  { %1059 = vmatpush.bf16.msra.mxu3 %v2827_v0  ;;  %v3608_v0 = vld [vmem:[#allocation5 + $0x364] sm:$0xf] }
 0x25b   :  { %1270 = vmatpush.bf16.msrb.mxu1 %v2967_v1 }
 0x25c   :  { %1281 = vmatpush.bf16.msrb.mxu2 %v3007_v42  ;;  %v2927_v42 = vor.u32 %v3598_v40, %v2926_v39  ;;  %v3062_v39 = vld [vmem:[#allocation5 + $0x420] sm:$0xf]  ;;  %v3633_v40 = vld [vmem:[#allocation5 + $0x428] sm:$0xf0] }
 0x25d   :  { %1496 = vmatpush.bf16.msra.mxu0 %v3099_v49  ;;  %v3630_v49 = vld [vmem:[#allocation5 + $0x410] sm:$0xf0] }
 0x25e   :  { %1295 = vmatpush.bf16.msrb.mxu3 %v3011_v43  ;;  %v901_v43 = vld [vmem:[#allocation7 + $0x9] sm:$0x7] }
 0x25f   :  { %v904_v44 = vperm.slane %v901_v43, 0  ;;  %v905_v59 = vperm.slane %v901_v43, 1 }
 0x260   :  { %1282 = vmatpush.bf16.msrb.mxu2 %v2995_v51  ;;  %v3106_v51 = vld [vmem:[#allocation5 + $0x470] sm:$0xf] }
 0x262   :  { %1296 = vmatpush.bf16.msrb.mxu3 %v2999_v52  ;;  %v3643_v52 = vld [vmem:[#allocation5 + $0x478] sm:$0xf0] }
 0x263   :  { %v3107_v56 = vor.u32 %v3643_v52, %v3106_v51  ;;  %v3052_v52 = vld [vmem:[#allocation5 + $0x414] sm:$0xf0] }
 0x264   :  { %1283 = vmatpush.bf16.msrb.mxu2 %v2983_v60 }
 0x266   :  { %1297 = vmatpush.bf16.msrb.mxu3 %v2987_v61 }
 0x2d1   :  { %v832_v5 = vpop.f32.mrf.mxu0 }
 0x2d2   :  { %v846_v8 = vpop.f32.mrf.mxu1  ;;  %v833_v15 = vadd.f32 %v832_v5, %v676_v9  ;;  %v2971_v5 = vor.u32 %v3608_v0, %v2968_v2  ;;  %v906_v2 = vperm.slane %v901_v43, 2  ;;  %v3064_v43 = vld [vmem:[#allocation5 + $0x42c] sm:$0xf0] }
 0x2d3   :  { %v847_v21 = vadd.f32 %v846_v8, %v677_v16  ;;  %v3606_v8 = vld [vmem:[#allocation5 + $0x350] sm:$0xf0] }
 0x2d4   :  { %v859_v19 = vmax.f32 %v833_v15, 0.0  ;;  %1284 = vmatpush.bf16.msrb.mxu2 %v2971_v5 }
 0x2d6   :  { %v861_v25 = vsub.f32 %v859_v19, %v847_v21 }
 0x2d7   :  { %v818_v4 = vpop.f32.mrf.mxu3 }
 0x2d8   :  { %v819_v6 = vadd.f32 %v818_v4, %v675_v3  ;;  %v3610_v4 = vld [vmem:[#allocation5 + $0x370] sm:$0xf0] }
 0x2d9   :  { %v834_v13 = vpop.f32.mrf.mxu0 }
 0x2da   :  { %v851_v7 = vmul.f32 0.5, %v819_v6  ;;  %v835_v18 = vadd.f32 %v834_v13, %v676_v9  ;;  %v848_v20 = vpop.f32.mrf.mxu1  ;;  %v3605_v9 = vld [vmem:[#allocation5 + $0x34c] sm:$0xf]  ;;  %v3607_v13 = vld [vmem:[#allocation5 + $0x358] sm:$0xf0] }
 0x2db   :  { %v849_v26 = vadd.f32 %v848_v20, %v677_v16  ;;  %v2942_v16 = vld [vmem:[#allocation5 + $0x330] sm:$0xf]  ;;  %v2944_v20 = vld [vmem:[#allocation5 + $0x33c] sm:$0xf0] }
 0x2dc   :  { %3768 = vtanh.f32 %v851_v7  ;;  %v860_v23 = vmax.f32 %v835_v18, 0.0  ;;  %v2954_v7 = vld [vmem:[#allocation5 + $0x348] sm:$0xf]  ;;  %v3602_v18 = vld [vmem:[#allocation5 + $0x334] sm:$0xf] }
 0x2de   :  { %v862_v29 = vsub.f32 %v860_v23, %v849_v26  ;;  %v2947_v23 = vor.u32 %v3602_v18, %v2944_v20 }
 0x2df   :  { %v820_v10 = vpop.f32.mrf.mxu3 }
 0x2e0   :  { %v821_v11 = vadd.f32 %v820_v10, %v675_v3  ;;  %v2974_v3 = vld [vmem:[#allocation5 + $0x368] sm:$0xf]  ;;  %v2955_v10 = vor.u32 %v3606_v8, %v2954_v7 }
 0x2e1   :  { %v2975_v6 = vor.u32 %v3610_v4, %v2974_v3 }
 0x2e2   :  { %v3769_v12 = vpop.eup %3768  ;;  %v852_v14 = vmul.f32 0.5, %v821_v11  ;;  %v2956_v11 = vld [vmem:[#allocation5 + $0x354] sm:$0xf0]  ;;  %1271 = vmatpush.bf16.msrb.mxu1 %v2955_v10 }
 0x2e3   :  { %v855_v17 = vadd.f32 1.0, %v3769_v12  ;;  %1298 = vmatpush.bf16.msrb.mxu3 %v2975_v6  ;;  %v2962_v12 = vld [vmem:[#allocation5 + $0x350] sm:$0xf] }
 0x2e4   :  { %3770 = vtanh.f32 %v852_v14  ;;  %v2959_v14 = vor.u32 %v3605_v9, %v2956_v11  ;;  %v2963_v15 = vor.u32 %v3607_v13, %v2962_v12 }
 0x2e5   :  { %v857_v22 = vmul.f32 0.5, %v855_v17  ;;  %v3603_v17 = vld [vmem:[#allocation5 + $0x338] sm:$0xf0] }
 0x2e6   :  { %1285 = vmatpush.bf16.msrb.mxu2 %v2959_v14  ;;  %v2943_v19 = vor.u32 %v3603_v17, %v2942_v16 }
 0x2e7   :  { %v863_v28 = vmul.f32 %v861_v25, %v857_v22  ;;  %1299 = vmatpush.bf16.msrb.mxu3 %v2963_v15  ;;  %v3604_v22 = vld [vmem:[#allocation5 + $0x340] sm:$0xf0]  ;;  %v2930_v25 = vld [vmem:[#allocation5 + $0x318] sm:$0xf] }
 0x2e8   :  { %1272 = vmatpush.bf16.msrb.mxu1 %v2943_v19 }
 0x2e9   :  { %v865_v32 = vadd.f32 %v863_v28, %v847_v21  ;;  %v2950_v21 = vld [vmem:[#allocation5 + $0x338] sm:$0xf] }
 0x2ea   :  { %v3771_v24 = vpop.eup %3770  ;;  %1286 = vmatpush.bf16.msrb.mxu2 %v2947_v23  ;;  %v3638_v23 = vld [vmem:[#allocation5 + $0x454] sm:$0xf] }
 0x2eb   :  { %v856_v27 = vadd.f32 1.0, %v3771_v24  ;;  %v2951_v24 = vor.u32 %v3604_v22, %v2950_v21  ;;  %v3086_v21 = vld [vmem:[#allocation5 + $0x450] sm:$0xf]  ;;  %v3639_v22 = vld [vmem:[#allocation5 + $0x458] sm:$0xf0] }
 0x2ed   :  { %v858_v30 = vmul.f32 0.5, %v856_v27  ;;  %1300 = vmatpush.bf16.msrb.mxu3 %v2951_v24  ;;  %v3599_v27 = vld [vmem:[#allocation5 + $0x31c] sm:$0xf]  ;;  %v3087_v24 = vor.u32 %v3639_v22, %v3086_v21  ;;  %v3194_v22 = vld [vmem:[#allocation5 + $0x528] sm:$0xf] }
 0x2ef   :  { %v864_v31 = vmul.f32 %v862_v29, %v858_v30  ;;  %v2932_v29 = vld [vmem:[#allocation5 + $0x324] sm:$0xf0]  ;;  %v2938_v30 = vld [vmem:[#allocation5 + $0x320] sm:$0xf]  ;;  %1497 = vmatpush.bf16.msra.mxu0 %v3087_v24  ;;  %v3665_v24 = vld [vmem:[#allocation5 + $0x52c] sm:$0xf] }
 0x2f1   :  { %v866_v33 = vadd.f32 %v864_v31, %v849_v26  ;;  %v3600_v26 = vld [vmem:[#allocation5 + $0x320] sm:$0xf0]  ;;  %v3601_v31 = vld [vmem:[#allocation5 + $0x328] sm:$0xf0] }
 0x2f2   :  { %v2931_v28 = vor.u32 %v3600_v26, %v2930_v25  ;;  %v3088_v25 = vld [vmem:[#allocation5 + $0x45c] sm:$0xf0]  ;;  %v3094_v26 = vld [vmem:[#allocation5 + $0x458] sm:$0xf] }
 0x2f3   :  { %v902_v34 = vpack.c.bf16 %v866_v33, %v865_v32  ;;  %v2935_v32 = vor.u32 %v3599_v27, %v2932_v29  ;;  %v2939_v33 = vor.u32 %v3601_v31, %v2938_v30  ;;  %v3640_v27 = vld [vmem:[#allocation5 + $0x460] sm:$0xf0]  ;;  %v3074_v30 = vld [vmem:[#allocation5 + $0x438] sm:$0xf] }
 0x2f4   :  { %1273 = vmatpush.bf16.msrb.mxu1 %v2931_v28  ;;  %v3091_v28 = vor.u32 %v3638_v23, %v3088_v25  ;;  %v3095_v29 = vor.u32 %v3640_v27, %v3094_v26  ;;  %v3636_v31 = vld [vmem:[#allocation5 + $0x440] sm:$0xf0]  ;;  %v3666_v23 = vld [vmem:[#allocation5 + $0x530] sm:$0xf0]  ;;  %v3196_v27 = vld [vmem:[#allocation5 + $0x534] sm:$0xf0] }
 0x2f5   :  { %1046 = vmatmul.bf16.vlgmr.msra.gmra.mxu2 %v902_v34  ;;  %1060 = vmatmul.bf16.vlgmr.msra.gmra.mxu3 %v902_v34  ;;  %v3195_v26 = vor.u32 %v3666_v23, %v3194_v22  ;;  %v3658_v22 = vld [vmem:[#allocation5 + $0x4f0] sm:$0xf0] }
 0x2f6   :  { %1074 = vmatmul.bf16.vlgmr.msrb.gmra.mxu0 %v902_v34  ;;  %1287 = vmatpush.bf16.msrb.mxu2 %v2935_v32  ;;  %v2918_v34 = vld [vmem:[#allocation5 + $0x300] sm:$0xf]  ;;  %v3635_v32 = vld [vmem:[#allocation5 + $0x43c] sm:$0xf] }
 0x2f7   :  { %1301 = vmatpush.bf16.msrb.mxu3 %v2939_v33  ;;  %v2919_v37 = vor.u32 %v3597_v35, %v2918_v34  ;;  %v3075_v33 = vor.u32 %v3636_v31, %v3074_v30  ;;  %v3076_v34 = vld [vmem:[#allocation5 + $0x444] sm:$0xf0]  ;;  %v3082_v35 = vld [vmem:[#allocation5 + $0x440] sm:$0xf]  ;;  %v3199_v31 = vor.u32 %v3665_v24, %v3196_v27  ;;  %v3653_v27 = vld [vmem:[#allocation5 + $0x4cc] sm:$0xf] }
 0x2f8   :  { %v3079_v36 = vor.u32 %v3635_v32, %v3076_v34 }
 0x2f9   :  { %1274 = vmatpush.bf16.msrb.mxu1 %v2919_v37  ;;  %v3637_v37 = vld [vmem:[#allocation5 + $0x448] sm:$0xf0]  ;;  %1498 = vmatpush.bf16.msra.mxu0 %v3075_v33 }
 0x2fa   :  { %1288 = vmatpush.bf16.msrb.mxu2 %v2923_v41  ;;  %v3083_v38 = vor.u32 %v3637_v37, %v3082_v35  ;;  %v3632_v41 = vld [vmem:[#allocation5 + $0x424] sm:$0xf] }
 0x2fb   :  { %1302 = vmatpush.bf16.msrb.mxu3 %v2927_v42  ;;  %v3063_v42 = vor.u32 %v3633_v40, %v3062_v39  ;;  %v3067_v46 = vor.u32 %v3632_v41, %v3064_v43 }
 0x2fd   :  { %1510 = vmatpush.bf16.msra.mxu1 %v3103_v55  ;;  %1499 = vmatpush.bf16.msra.mxu0 %v3063_v42  ;;  %v3055_v55 = vor.u32 %v3629_v50, %v3052_v52 }
 0x2fe   :  { %1524 = vmatpush.bf16.msra.mxu2 %v3107_v56 }
 0x2ff   :  { %1725 = vmatpush.bf16.msra.mxu3 %v3195_v26  ;;  %v3654_v26 = vld [vmem:[#allocation5 + $0x4d0] sm:$0xf0] }
 0x301   :  { %1511 = vmatpush.bf16.msra.mxu1 %v3091_v28  ;;  %v3202_v28 = vld [vmem:[#allocation5 + $0x530] sm:$0xf] }
 0x302   :  { %1525 = vmatpush.bf16.msra.mxu2 %v3095_v29  ;;  %v3667_v29 = vld [vmem:[#allocation5 + $0x538] sm:$0xf0] }
 0x303   :  { %v3203_v32 = vor.u32 %v3667_v29, %v3202_v28  ;;  %v3148_v29 = vld [vmem:[#allocation5 + $0x4d4] sm:$0xf0] }
 0x305   :  { %1512 = vmatpush.bf16.msra.mxu1 %v3079_v36 }
 0x306   :  { %1526 = vmatpush.bf16.msra.mxu2 %v3083_v38 }
 0x309   :  { %1513 = vmatpush.bf16.msra.mxu1 %v3067_v46 }
 0x30d   :  { %1514 = vmatpush.bf16.msra.mxu1 %v3055_v55 }
 0x373   :  { %v1075_v58 = vpop.f32.mrf.mxu0 }
 0x374   :  { %v1076_v7 = vadd.f32 %v1075_v58, %v906_v2  ;;  %v3627_v58 = vld [vmem:[#allocation5 + $0x3f8] sm:$0xf0] }
 0x378   :  { %v1047_v48 = vpop.f32.mrf.mxu2  ;;  %v1061_v54 = vpop.f32.mrf.mxu3 }
 0x379   :  { %v1048_v53 = vadd.f32 %v1047_v48, %v904_v44  ;;  %v1062_v1 = vadd.f32 %v1061_v54, %v905_v59  ;;  %v3050_v48 = vld [vmem:[#allocation5 + $0x408] sm:$0xf]  ;;  %v3631_v54 = vld [vmem:[#allocation5 + $0x418] sm:$0xf0] }
 0x37a   :  { %v3051_v51 = vor.u32 %v3630_v49, %v3050_v48 }
 0x37b   :  { %v1080_v57 = vmul.f32 0.5, %v1048_v53  ;;  %v1088_v5 = vmax.f32 %v1062_v1, 0.0  ;;  %v1077_v6 = vpop.f32.mrf.mxu0  ;;  %v3058_v53 = vld [vmem:[#allocation5 + $0x410] sm:$0xf] }
 0x37c   :  { %v1078_v12 = vadd.f32 %v1077_v6, %v906_v2  ;;  %v3059_v56 = vor.u32 %v3631_v54, %v3058_v53  ;;  %1500 = vmatpush.bf16.msra.mxu0 %v3051_v51  ;;  %v3026_v2 = vld [vmem:[#allocation5 + $0x3d8] sm:$0xf]  ;;  %v3028_v6 = vld [vmem:[#allocation5 + $0x3e4] sm:$0xf0] }
 0x37d   :  { %3772 = vtanh.f32 %v1080_v57  ;;  %v1090_v11 = vsub.f32 %v1088_v5, %v1076_v7  ;;  %v3038_v57 = vld [vmem:[#allocation5 + $0x3f0] sm:$0xf] }
 0x380   :  { %v1049_v60 = vpop.f32.mrf.mxu2  ;;  %v1063_v0 = vpop.f32.mrf.mxu3 }
 0x381   :  { %v1050_v61 = vadd.f32 %v1049_v60, %v904_v44  ;;  %v1064_v4 = vadd.f32 %v1063_v0, %v905_v59  ;;  %v3070_v44 = vld [vmem:[#allocation5 + $0x428] sm:$0xf]  ;;  %v3626_v59 = vld [vmem:[#allocation5 + $0x3f4] sm:$0xf]  ;;  %v3039_v60 = vor.u32 %v3627_v58, %v3038_v57 }
 0x382   :  { %v3071_v47 = vor.u32 %v3634_v45, %v3070_v44 }
 0x383   :  { %v3773_v62 = vpop.eup %3772  ;;  %v1081_v63 = vmul.f32 0.5, %v1050_v61  ;;  %v1089_v9 = vmax.f32 %v1064_v4, 0.0  ;;  %v3040_v61 = vld [vmem:[#allocation5 + $0x3fc] sm:$0xf0]  ;;  %1501 = vmatpush.bf16.msra.mxu0 %v3039_v60  ;;  %v3623_v4 = vld [vmem:[#allocation5 + $0x3dc] sm:$0xf] }
 0x384   :  { %v1084_v3 = vadd.f32 1.0, %v3773_v62  ;;  %1527 = vmatpush.bf16.msra.mxu2 %v3071_v47  ;;  %v3046_v62 = vld [vmem:[#allocation5 + $0x3f8] sm:$0xf]  ;;  %v3043_v0 = vor.u32 %v3626_v59, %v3040_v61 }
 0x385   :  { %3774 = vtanh.f32 %v1081_v63  ;;  %v1091_v16 = vsub.f32 %v1089_v9, %v1078_v12  ;;  %v3628_v63 = vld [vmem:[#allocation5 + $0x400] sm:$0xf0]  ;;  %v3031_v9 = vor.u32 %v3623_v4, %v3028_v6 }
 0x386   :  { %v1086_v8 = vmul.f32 0.5, %v1084_v3  ;;  %v3047_v1 = vor.u32 %v3628_v63, %v3046_v62  ;;  %1515 = vmatpush.bf16.msra.mxu1 %v3043_v0  ;;  %v3624_v3 = vld [vmem:[#allocation5 + $0x3e0] sm:$0xf0]  ;;  %v3182_v62 = vld [vmem:[#allocation5 + $0x510] sm:$0xf] }
 0x387   :  { %v3027_v5 = vor.u32 %v3624_v3, %v3026_v2  ;;  %v3663_v63 = vld [vmem:[#allocation5 + $0x518] sm:$0xf0]  ;;  %v3662_v0 = vld [vmem:[#allocation5 + $0x514] sm:$0xf]  ;;  %v3184_v2 = vld [vmem:[#allocation5 + $0x51c] sm:$0xf0] }
 0x388   :  { %v1092_v14 = vmul.f32 %v1090_v11, %v1086_v8  ;;  %1528 = vmatpush.bf16.msra.mxu2 %v3059_v56  ;;  %v3625_v8 = vld [vmem:[#allocation5 + $0x3e8] sm:$0xf0]  ;;  %v3190_v3 = vld [vmem:[#allocation5 + $0x518] sm:$0xf]  ;;  %v3664_v4 = vld [vmem:[#allocation5 + $0x520] sm:$0xf0] }
 0x389   :  { %v1130_v11 = vld [vmem:[#allocation7 + $0xc] sm:$0x7]  ;;  %1502 = vmatpush.bf16.msra.mxu0 %v3027_v5  ;;  %v3187_v5 = vor.u32 %v3662_v0, %v3184_v2  ;;  %v3191_v6 = vor.u32 %v3664_v4, %v3190_v3 }
 0x38a   :  { %v1094_v18 = vadd.f32 %v1092_v14, %v1076_v7  ;;  %v3034_v7 = vld [vmem:[#allocation5 + $0x3e0] sm:$0xf]  ;;  %1516 = vmatpush.bf16.msra.mxu1 %v3031_v9  ;;  %v3620_v14 = vld [vmem:[#allocation5 + $0x3c4] sm:$0xf]  ;;  %v1133_v21 = vperm.slane %v1130_v11, 0  ;;  %v1134_v36 = vperm.slane %v1130_v11, 1 }
 0x38b   :  { %v3775_v10 = vpop.eup %3774  ;;  %v1135_v43 = vperm.slane %v1130_v11, 2  ;;  %v3659_v9 = vld [vmem:[#allocation5 + $0x4fc] sm:$0xf]  ;;  %v3172_v11 = vld [vmem:[#allocation5 + $0x504] sm:$0xf0] }
 0x38c   :  { %v1085_v13 = vadd.f32 1.0, %v3775_v10  ;;  %1529 = vmatpush.bf16.msra.mxu2 %v3047_v1  ;;  %v3035_v10 = vor.u32 %v3625_v8, %v3034_v7  ;;  %v3183_v1 = vor.u32 %v3663_v63, %v3182_v62  ;;  %v3170_v7 = vld [vmem:[#allocation5 + $0x4f8] sm:$0xf]  ;;  %v3660_v8 = vld [vmem:[#allocation5 + $0x500] sm:$0xf0] }
 0x38e   :  { %v1087_v15 = vmul.f32 0.5, %v1085_v13  ;;  %v3621_v13 = vld [vmem:[#allocation5 + $0x3c8] sm:$0xf0]  ;;  %1726 = vmatpush.bf16.msra.mxu3 %v3183_v1 }
 0x390   :  { %v1093_v17 = vmul.f32 %v1091_v16, %v1087_v15  ;;  %1530 = vmatpush.bf16.msra.mxu2 %v3035_v10  ;;  %v3016_v16 = vld [vmem:[#allocation5 + $0x3cc] sm:$0xf0]  ;;  %v3171_v10 = vor.u32 %v3660_v8, %v3170_v7 }
 0x392   :  { %v1095_v19 = vadd.f32 %v1093_v17, %v1078_v12  ;;  %v3014_v12 = vld [vmem:[#allocation5 + $0x3c0] sm:$0xf]  ;;  %v3022_v17 = vld [vmem:[#allocation5 + $0x3c8] sm:$0xf]  ;;  %1727 = vmatpush.bf16.msra.mxu3 %v3171_v10 }
 0x393   :  { %v3015_v15 = vor.u32 %v3621_v13, %v3014_v12  ;;  %v3178_v12 = vld [vmem:[#allocation5 + $0x500] sm:$0xf]  ;;  %v3175_v13 = vor.u32 %v3659_v9, %v3172_v11 }
 0x394   :  { %v1131_v20 = vpack.c.bf16 %v1095_v19, %v1094_v18  ;;  %v3622_v18 = vld [vmem:[#allocation5 + $0x3d0] sm:$0xf0]  ;;  %v3019_v19 = vor.u32 %v3620_v14, %v3016_v16  ;;  %v3661_v14 = vld [vmem:[#allocation5 + $0x508] sm:$0xf0]  ;;  %v3158_v16 = vld [vmem:[#allocation5 + $0x4e0] sm:$0xf] }
 0x395   :  { %1503 = vmatpush.bf16.msra.mxu0 %v3015_v15  ;;  %v3179_v15 = vor.u32 %v3661_v14, %v3178_v12 }
 0x396   :  { %1275 = vmatmul.bf16.vlgmr.msrb.gmra.mxu1 %v1131_v20  ;;  %1289 = vmatmul.bf16.vlgmr.msrb.gmra.mxu2 %v1131_v20 }
 0x397   :  { %1303 = vmatmul.bf16.vlgmr.msrb.gmra.mxu3 %v1131_v20  ;;  %v3023_v20 = vor.u32 %v3622_v18, %v3022_v17  ;;  %1517 = vmatpush.bf16.msra.mxu1 %v3019_v19  ;;  %v3657_v17 = vld [vmem:[#allocation5 + $0x4e8] sm:$0xf0]  ;;  %v3656_v18 = vld [vmem:[#allocation5 + $0x4e4] sm:$0xf] }
 0x398   :  { %v3159_v19 = vor.u32 %v3657_v17, %v3158_v16 }
 0x399   :  { %1531 = vmatpush.bf16.msra.mxu2 %v3023_v20  ;;  %1739 = vmatpush.bf16.msrb.mxu0 %v3199_v31  ;;  %v3160_v20 = vld [vmem:[#allocation5 + $0x4ec] sm:$0xf0]  ;;  %v3655_v31 = vld [vmem:[#allocation5 + $0x4d8] sm:$0xf0] }
 0x39a   :  { %v3163_v23 = vor.u32 %v3656_v18, %v3160_v20  ;;  %1728 = vmatpush.bf16.msra.mxu3 %v3159_v19 }
 0x39b   :  { %1753 = vmatpush.bf16.msrb.mxu1 %v3203_v32  ;;  %v3151_v32 = vor.u32 %v3653_v27, %v3148_v29 }
 0x39d   :  { %1740 = vmatpush.bf16.msrb.mxu0 %v3187_v5 }
 0x39f   :  { %1754 = vmatpush.bf16.msrb.mxu1 %v3191_v6 }
 0x3a1   :  { %1741 = vmatpush.bf16.msrb.mxu0 %v3175_v13 }
 0x3a3   :  { %1755 = vmatpush.bf16.msrb.mxu1 %v3179_v15 }
 0x3a5   :  { %1742 = vmatpush.bf16.msrb.mxu0 %v3163_v23 }
 0x3a9   :  { %1743 = vmatpush.bf16.msrb.mxu0 %v3151_v32  ;;  %v3689_v32 = vld [vmem:[#allocation5 + $0x5ec] sm:$0xf] }
 0x413   :  { %v1276_v25 = vpop.f32.mrf.mxu1 }
 0x414   :  { %v1277_v30 = vadd.f32 %v1276_v25, %v1133_v21  ;;  %v3146_v25 = vld [vmem:[#allocation5 + $0x4c8] sm:$0xf] }
 0x415   :  { %v3147_v28 = vor.u32 %v3654_v26, %v3146_v25 }
 0x416   :  { %v1309_v33 = vmul.f32 0.5, %v1277_v30  ;;  %v3154_v30 = vld [vmem:[#allocation5 + $0x4d0] sm:$0xf] }
 0x417   :  { %1729 = vmatpush.bf16.msra.mxu3 %v3147_v28 }
 0x418   :  { %3776 = vtanh.f32 %v1309_v33  ;;  %v3155_v33 = vor.u32 %v3655_v31, %v3154_v30  ;;  %v3290_v30 = vld [vmem:[#allocation5 + $0x5e8] sm:$0xf]  ;;  %v3690_v31 = vld [vmem:[#allocation5 + $0x5f0] sm:$0xf0] }
 0x419   :  { %v1290_v34 = vpop.f32.mrf.mxu2 }
 0x41a   :  { %v1304_v35 = vpop.f32.mrf.mxu3  ;;  %v1291_v41 = vadd.f32 %v1290_v34, %v1134_v36  ;;  %v3134_v34 = vld [vmem:[#allocation5 + $0x4b0] sm:$0xf] }
 0x41b   :  { %v1278_v37 = vpop.f32.mrf.mxu1  ;;  %v1305_v49 = vadd.f32 %v1304_v35, %v1135_v43  ;;  %v3651_v35 = vld [vmem:[#allocation5 + $0x4b8] sm:$0xf0] }
 0x41c   :  { %v1279_v38 = vadd.f32 %v1278_v37, %v1133_v21  ;;  %v1317_v46 = vmax.f32 %v1291_v41, 0.0  ;;  %v3166_v21 = vld [vmem:[#allocation5 + $0x4e8] sm:$0xf]  ;;  %v3135_v37 = vor.u32 %v3651_v35, %v3134_v34  ;;  %v3292_v34 = vld [vmem:[#allocation5 + $0x5f4] sm:$0xf0] }
 0x41d   :  { %v3167_v24 = vor.u32 %v3658_v22, %v3166_v21  ;;  %v3298_v35 = vld [vmem:[#allocation5 + $0x5f0] sm:$0xf] }
 0x41e   :  { %v3777_v39 = vpop.eup %3776  ;;  %v1310_v40 = vmul.f32 0.5, %v1279_v38  ;;  %v1319_v52 = vsub.f32 %v1317_v46, %v1305_v49  ;;  %v3136_v38 = vld [vmem:[#allocation5 + $0x4bc] sm:$0xf0]  ;;  %1730 = vmatpush.bf16.msra.mxu3 %v3135_v37  ;;  %v3295_v37 = vor.u32 %v3689_v32, %v3292_v34  ;;  %v3214_v34 = vld [vmem:[#allocation5 + $0x548] sm:$0xf] }
 0x41f   :  { %v1313_v42 = vadd.f32 1.0, %v3777_v39  ;;  %1756 = vmatpush.bf16.msrb.mxu1 %v3167_v24  ;;  %v3142_v39 = vld [vmem:[#allocation5 + $0x4b8] sm:$0xf] }
 0x420   :  { %3778 = vtanh.f32 %v1310_v40  ;;  %v3652_v40 = vld [vmem:[#allocation5 + $0x4c0] sm:$0xf0] }
 0x421   :  { %v1292_v44 = vpop.f32.mrf.mxu2  ;;  %v1315_v48 = vmul.f32 0.5, %v1313_v42  ;;  %v3143_v42 = vor.u32 %v3652_v40, %v3142_v39  ;;  %v3278_v39 = vld [vmem:[#allocation5 + $0x5d0] sm:$0xf]  ;;  %v3687_v40 = vld [vmem:[#allocation5 + $0x5d8] sm:$0xf0] }
 0x422   :  { %v1293_v45 = vadd.f32 %v1292_v44, %v1134_v36  ;;  %v1306_v47 = vpop.f32.mrf.mxu3  ;;  %v3650_v36 = vld [vmem:[#allocation5 + $0x4b4] sm:$0xf]  ;;  %v3648_v44 = vld [vmem:[#allocation5 + $0x4a0] sm:$0xf0] }
 0x423   :  { %v1307_v54 = vadd.f32 %v1306_v47, %v1135_v43  ;;  %v1321_v55 = vmul.f32 %v1319_v52, %v1315_v48  ;;  %1757 = vmatpush.bf16.msrb.mxu1 %v3155_v33  ;;  %v3139_v41 = vor.u32 %v3650_v36, %v3136_v38  ;;  %v3122_v43 = vld [vmem:[#allocation5 + $0x498] sm:$0xf]  ;;  %v3124_v47 = vld [vmem:[#allocation5 + $0x4a4] sm:$0xf0]  ;;  %v3130_v48 = vld [vmem:[#allocation5 + $0x4a0] sm:$0xf]  ;;  %v3291_v33 = vor.u32 %v3690_v31, %v3290_v30 }
 0x424   :  { %v1318_v50 = vmax.f32 %v1293_v45, 0.0  ;;  %v3647_v45 = vld [vmem:[#allocation5 + $0x49c] sm:$0xf]  ;;  %v3123_v46 = vor.u32 %v3648_v44, %v3122_v43  ;;  %v1359_v52 = vld [vmem:[#allocation7 + $0xf] sm:$0x7] }
 0x425   :  { %v1323_v59 = vadd.f32 %v1321_v55, %v1305_v49  ;;  %1744 = vmatpush.bf16.msrb.mxu0 %v3139_v41  ;;  %v3649_v49 = vld [vmem:[#allocation5 + $0x4a8] sm:$0xf0]  ;;  %v3644_v55 = vld [vmem:[#allocation5 + $0x484] sm:$0xf]  ;;  %v1362_v62 = vperm.slane %v1359_v52, 0  ;;  %v1363_v6 = vperm.slane %v1359_v52, 1  ;;  %1954 = vmatpush.bf16.msrb.mxu2 %v3291_v33 }
 0x426   :  { %v3779_v51 = vpop.eup %3778  ;;  %v1320_v57 = vsub.f32 %v1318_v50, %v1307_v54  ;;  %v3127_v50 = vor.u32 %v3647_v45, %v3124_v47  ;;  %1731 = vmatpush.bf16.msra.mxu3 %v3123_v46  ;;  %v1364_v9 = vperm.slane %v1359_v52, 2  ;;  %v3691_v36 = vld [vmem:[#allocation5 + $0x5f8] sm:$0xf0]  ;;  %v3686_v41 = vld [vmem:[#allocation5 + $0x5d4] sm:$0xf] }
 0x427   :  { %v1314_v53 = vadd.f32 1.0, %v3779_v51  ;;  %1758 = vmatpush.bf16.msrb.mxu1 %v3143_v42  ;;  %v3131_v51 = vor.u32 %v3649_v49, %v3130_v48  ;;  %v3299_v38 = vor.u32 %v3691_v36, %v3298_v35  ;;  %v3279_v42 = vor.u32 %v3687_v40, %v3278_v39  ;;  %v3280_v43 = vld [vmem:[#allocation5 + $0x5dc] sm:$0xf0]  ;;  %v3286_v44 = vld [vmem:[#allocation5 + $0x5d8] sm:$0xf] }
 0x428   :  { %v3688_v45 = vld [vmem:[#allocation5 + $0x5e0] sm:$0xf0]  ;;  %v3283_v46 = vor.u32 %v3686_v41, %v3280_v43  ;;  %v3266_v48 = vld [vmem:[#allocation5 + $0x5b8] sm:$0xf]  ;;  %v3268_v52 = vld [vmem:[#allocation5 + $0x5c4] sm:$0xf0] }
 0x429   :  { %v1316_v56 = vmul.f32 0.5, %v1314_v53  ;;  %1745 = vmatpush.bf16.msrb.mxu0 %v3127_v50  ;;  %v3110_v53 = vld [vmem:[#allocation5 + $0x480] sm:$0xf]  ;;  %v3287_v47 = vor.u32 %v3688_v45, %v3286_v44  ;;  %1955 = vmatpush.bf16.msrb.mxu2 %v3279_v42  ;;  %v3684_v49 = vld [vmem:[#allocation5 + $0x5c0] sm:$0xf0] }
 0x42a   :  { %v3683_v50 = vld [vmem:[#allocation5 + $0x5bc] sm:$0xf]  ;;  %v3669_v30 = vld [vmem:[#allocation5 + $0x548] sm:$0xf0]  ;;  %v3668_v31 = vld [vmem:[#allocation5 + $0x544] sm:$0xf] }
 0x42b   :  { %v1322_v58 = vmul.f32 %v1320_v57, %v1316_v56  ;;  %1759 = vmatpush.bf16.msrb.mxu1 %v3131_v51  ;;  %v3112_v57 = vld [vmem:[#allocation5 + $0x48c] sm:$0xf0]  ;;  %v3267_v51 = vor.u32 %v3684_v49, %v3266_v48  ;;  %v3670_v35 = vld [vmem:[#allocation5 + $0x550] sm:$0xf0] }
 0x42c   :  { %v3208_v33 = vld [vmem:[#allocation5 + $0x54c] sm:$0xf0] }
 0x42d   :  { %v1324_v60 = vadd.f32 %v1322_v58, %v1307_v54  ;;  %v3645_v54 = vld [vmem:[#allocation5 + $0x488] sm:$0xf0]  ;;  %v3118_v58 = vld [vmem:[#allocation5 + $0x488] sm:$0xf]  ;;  %1956 = vmatpush.bf16.msrb.mxu2 %v3267_v51  ;;  %v3211_v36 = vor.u32 %v3668_v31, %v3208_v33 }
 0x42e   :  { %v3111_v56 = vor.u32 %v3645_v54, %v3110_v53  ;;  %v3274_v53 = vld [vmem:[#allocation5 + $0x5c0] sm:$0xf]  ;;  %v3685_v54 = vld [vmem:[#allocation5 + $0x5c8] sm:$0xf0] }
 0x42f   :  { %v1360_v61 = vpack.c.bf16 %v1324_v60, %v1323_v59  ;;  %v3646_v59 = vld [vmem:[#allocation5 + $0x490] sm:$0xf0]  ;;  %v3115_v60 = vor.u32 %v3644_v55, %v3112_v57  ;;  %v3271_v55 = vor.u32 %v3683_v50, %v3268_v52  ;;  %v3254_v57 = vld [vmem:[#allocation5 + $0x5a0] sm:$0xf]  ;;  %v3709_v31 = vld [vmem:[#allocation5 + $0x688] sm:$0xf0] }
 0x430   :  { %1732 = vmatpush.bf16.msra.mxu3 %v3111_v56  ;;  %v3275_v56 = vor.u32 %v3685_v54, %v3274_v53 }
 0x431   :  { %1504 = vmatmul.bf16.vlgmr.msra.gmra.mxu0 %v1360_v61  ;;  %1518 = vmatmul.bf16.vlgmr.msra.gmra.mxu1 %v1360_v61 }
 0x432   :  { %1532 = vmatmul.bf16.vlgmr.msra.gmra.mxu2 %v1360_v61  ;;  %v3119_v61 = vor.u32 %v3646_v59, %v3118_v58  ;;  %1746 = vmatpush.bf16.msrb.mxu0 %v3115_v60  ;;  %v3681_v58 = vld [vmem:[#allocation5 + $0x5a8] sm:$0xf0]  ;;  %v3680_v59 = vld [vmem:[#allocation5 + $0x5a4] sm:$0xf] }
 0x433   :  { %v3255_v60 = vor.u32 %v3681_v58, %v3254_v57 }
 0x434   :  { %1760 = vmatpush.bf16.msrb.mxu1 %v3119_v61  ;;  %1968 = vmatpush.bf16.msrb.mxu3 %v3295_v37  ;;  %v3256_v61 = vld [vmem:[#allocation5 + $0x5ac] sm:$0xf0]  ;;  %v3215_v37 = vor.u32 %v3670_v35, %v3214_v34  ;;  %v3350_v34 = vld [vmem:[#allocation5 + $0x660] sm:$0xf]  ;;  %v3705_v35 = vld [vmem:[#allocation5 + $0x668] sm:$0xf0] }
 0x435   :  { %1957 = vmatpush.bf16.msrb.mxu2 %v3255_v60 }
 0x436   :  { %1982 = vmatpush.bf16.msra.mxu0 %v3299_v38  ;;  %v1588_v38 = vld [vmem:[#allocation7 + $0x12] sm:$0x7] }
 0x437   :  { %v1591_v39 = vperm.slane %v1588_v38, 0  ;;  %v1592_v45 = vperm.slane %v1588_v38, 1  ;;  %v1593_v52 = vperm.slane %v1588_v38, 2  ;;  %v3352_v38 = vld [vmem:[#allocation5 + $0x66c] sm:$0xf0] }
 0x438   :  { %1969 = vmatpush.bf16.msrb.mxu3 %v3283_v46 }
 0x43a   :  { %1983 = vmatpush.bf16.msra.mxu0 %v3287_v47 }
 0x43c   :  { %1970 = vmatpush.bf16.msrb.mxu3 %v3271_v55 }
 0x43e   :  { %1984 = vmatpush.bf16.msra.mxu0 %v3275_v56 }
 0x4ae   :  { %v1505_v63 = vpop.f32.mrf.mxu0  ;;  %v1519_v2 = vpop.f32.mrf.mxu1 }
 0x4af   :  { %v1506_v0 = vadd.f32 %v1505_v63, %v1362_v62  ;;  %v1520_v12 = vadd.f32 %v1519_v2, %v1363_v6  ;;  %v3682_v63 = vld [vmem:[#allocation5 + $0x5b0] sm:$0xf0]  ;;  %v3242_v2 = vld [vmem:[#allocation5 + $0x588] sm:$0xf] }
 0x4b1   :  { %v1538_v1 = vmul.f32 0.5, %v1506_v0  ;;  %v1546_v17 = vmax.f32 %v1520_v12, 0.0  ;;  %v3259_v0 = vor.u32 %v3680_v59, %v3256_v61  ;;  %v3675_v12 = vld [vmem:[#allocation5 + $0x578] sm:$0xf0] }
 0x4b3   :  { %3780 = vtanh.f32 %v1538_v1  ;;  %1971 = vmatpush.bf16.msrb.mxu3 %v3259_v0 }
 0x4b5   :  { %v1533_v3 = vpop.f32.mrf.mxu2 }
 0x4b6   :  { %v1507_v4 = vpop.f32.mrf.mxu0  ;;  %v1521_v10 = vpop.f32.mrf.mxu1  ;;  %v1534_v14 = vadd.f32 %v1533_v3, %v1364_v9  ;;  %v3678_v3 = vld [vmem:[#allocation5 + $0x590] sm:$0xf0] }
 0x4b7   :  { %v1508_v5 = vadd.f32 %v1507_v4, %v1362_v62  ;;  %v1522_v15 = vadd.f32 %v1521_v10, %v1363_v6  ;;  %v3262_v62 = vld [vmem:[#allocation5 + $0x5a8] sm:$0xf]  ;;  %v3677_v4 = vld [vmem:[#allocation5 + $0x58c] sm:$0xf]  ;;  %v3244_v6 = vld [vmem:[#allocation5 + $0x594] sm:$0xf0] }
 0x4b8   :  { %v1548_v20 = vsub.f32 %v1546_v17, %v1534_v14  ;;  %v3263_v1 = vor.u32 %v3682_v63, %v3262_v62  ;;  %v3676_v17 = vld [vmem:[#allocation5 + $0x580] sm:$0xf0] }
 0x4b9   :  { %v3781_v7 = vpop.eup %3780  ;;  %v1539_v8 = vmul.f32 0.5, %v1508_v5  ;;  %v1547_v22 = vmax.f32 %v1522_v15, 0.0  ;;  %v3243_v5 = vor.u32 %v3678_v3, %v3242_v2  ;;  %v3232_v15 = vld [vmem:[#allocation5 + $0x57c] sm:$0xf0] }
 0x4ba   :  { %v1542_v11 = vadd.f32 1.0, %v3781_v7  ;;  %1985 = vmatpush.bf16.msra.mxu0 %v3263_v1  ;;  %v3250_v7 = vld [vmem:[#allocation5 + $0x590] sm:$0xf] }
 0x4bb   :  { %3782 = vtanh.f32 %v1539_v8  ;;  %v3679_v8 = vld [vmem:[#allocation5 + $0x598] sm:$0xf0]  ;;  %1958 = vmatpush.bf16.msrb.mxu2 %v3243_v5 }
 0x4bc   :  { %v1544_v16 = vmul.f32 0.5, %v1542_v11  ;;  %v3251_v10 = vor.u32 %v3679_v8, %v3250_v7  ;;  %v3230_v11 = vld [vmem:[#allocation5 + $0x570] sm:$0xf]  ;;  %v3386_v7 = vld [vmem:[#allocation5 + $0x6a8] sm:$0xf] }
 0x4bd   :  { %v1535_v13 = vpop.f32.mrf.mxu2  ;;  %v3714_v8 = vld [vmem:[#allocation5 + $0x6b0] sm:$0xf0] }
 0x4be   :  { %v1536_v18 = vadd.f32 %v1535_v13, %v1364_v9  ;;  %v1550_v23 = vmul.f32 %v1548_v20, %v1544_v16  ;;  %v3247_v9 = vor.u32 %v3677_v4, %v3244_v6  ;;  %1986 = vmatpush.bf16.msra.mxu0 %v3251_v10  ;;  %v3674_v13 = vld [vmem:[#allocation5 + $0x574] sm:$0xf]  ;;  %v3238_v16 = vld [vmem:[#allocation5 + $0x578] sm:$0xf]  ;;  %v3387_v10 = vor.u32 %v3714_v8, %v3386_v7  ;;  %v3693_v7 = vld [vmem:[#allocation5 + $0x608] sm:$0xf0] }
 0x4bf   :  { %v3218_v20 = vld [vmem:[#allocation5 + $0x558] sm:$0xf]  ;;  %v3692_v8 = vld [vmem:[#allocation5 + $0x604] sm:$0xf] }
 0x4c0   :  { %v1549_v25 = vsub.f32 %v1547_v22, %v1536_v18  ;;  %v1552_v27 = vadd.f32 %v1550_v23, %v1534_v14  ;;  %1972 = vmatpush.bf16.msrb.mxu3 %v3247_v9  ;;  %v3231_v14 = vor.u32 %v3675_v12, %v3230_v11  ;;  %v3671_v22 = vld [vmem:[#allocation5 + $0x55c] sm:$0xf]  ;;  %v3713_v9 = vld [vmem:[#allocation5 + $0x6ac] sm:$0xf]  ;;  %v3388_v11 = vld [vmem:[#allocation5 + $0x6b4] sm:$0xf0]  ;;  %2183 = vmatpush.bf16.msra.mxu1 %v3387_v10 }
 0x4c1   :  { %v3783_v19 = vpop.eup %3782  ;;  %v3394_v12 = vld [vmem:[#allocation5 + $0x6b0] sm:$0xf] }
 0x4c2   :  { %v1543_v21 = vadd.f32 1.0, %v3783_v19  ;;  %v3239_v19 = vor.u32 %v3676_v17, %v3238_v16  ;;  %1959 = vmatpush.bf16.msrb.mxu2 %v3231_v14  ;;  %v3391_v14 = vor.u32 %v3713_v9, %v3388_v11  ;;  %v3374_v16 = vld [vmem:[#allocation5 + $0x690] sm:$0xf]  ;;  %v3711_v17 = vld [vmem:[#allocation5 + $0x698] sm:$0xf0] }
 0x4c3   :  { %v3304_v10 = vld [vmem:[#allocation5 + $0x60c] sm:$0xf0]  ;;  %v3310_v11 = vld [vmem:[#allocation5 + $0x608] sm:$0xf] }
 0x4c4   :  { %v1545_v24 = vmul.f32 0.5, %v1543_v21  ;;  %1987 = vmatpush.bf16.msra.mxu0 %v3239_v19  ;;  %v3672_v21 = vld [vmem:[#allocation5 + $0x560] sm:$0xf0]  ;;  %v3375_v19 = vor.u32 %v3711_v17, %v3374_v16  ;;  %v3482_v17 = vld [vmem:[#allocation5 + $0x768] sm:$0xf] }
 0x4c5   :  { %v3219_v23 = vor.u32 %v3672_v21, %v3218_v20  ;;  %v3376_v20 = vld [vmem:[#allocation5 + $0x69c] sm:$0xf0]  ;;  %v3382_v21 = vld [vmem:[#allocation5 + $0x698] sm:$0xf] }
 0x4c6   :  { %v1551_v26 = vmul.f32 %v1549_v25, %v1545_v24  ;;  %v3220_v24 = vld [vmem:[#allocation5 + $0x564] sm:$0xf0]  ;;  %v3226_v25 = vld [vmem:[#allocation5 + $0x560] sm:$0xf]  ;;  %2184 = vmatpush.bf16.msra.mxu1 %v3375_v19  ;;  %v3737_v19 = vld [vmem:[#allocation5 + $0x76c] sm:$0xf] }
 0x4c7   :  { %1960 = vmatpush.bf16.msrb.mxu2 %v3219_v23 }
 0x4c8   :  { %v1553_v28 = vadd.f32 %v1551_v26, %v1536_v18  ;;  %v3235_v18 = vor.u32 %v3674_v13, %v3232_v15  ;;  %v3673_v26 = vld [vmem:[#allocation5 + $0x568] sm:$0xf0]  ;;  %v3715_v13 = vld [vmem:[#allocation5 + $0x6b8] sm:$0xf0] }
 0x4c9   :  { %v3395_v15 = vor.u32 %v3715_v13, %v3394_v12  ;;  %v3694_v12 = vld [vmem:[#allocation5 + $0x610] sm:$0xf0]  ;;  %v3307_v13 = vor.u32 %v3692_v8, %v3304_v10 }
 0x4ca   :  { %v1589_v29 = vpack.c.bf16 %v1553_v28, %v1552_v27  ;;  %1973 = vmatpush.bf16.msrb.mxu3 %v3235_v18  ;;  %v3223_v27 = vor.u32 %v3671_v22, %v3220_v24  ;;  %v3227_v28 = vor.u32 %v3673_v26, %v3226_v25  ;;  %v3710_v18 = vld [vmem:[#allocation5 + $0x694] sm:$0xf]  ;;  %v3712_v22 = vld [vmem:[#allocation5 + $0x6a0] sm:$0xf0]  ;;  %v3362_v25 = vld [vmem:[#allocation5 + $0x678] sm:$0xf] }
 0x4cb   :  { %v3379_v23 = vor.u32 %v3710_v18, %v3376_v20  ;;  %v3383_v24 = vor.u32 %v3712_v22, %v3382_v21  ;;  %v3708_v26 = vld [vmem:[#allocation5 + $0x680] sm:$0xf0]  ;;  %v3738_v18 = vld [vmem:[#allocation5 + $0x770] sm:$0xf0]  ;;  %v3484_v22 = vld [vmem:[#allocation5 + $0x774] sm:$0xf0] }
 0x4cc   :  { %1733 = vmatmul.bf16.vlgmr.msra.gmra.mxu3 %v1589_v29  ;;  %1747 = vmatmul.bf16.vlgmr.msrb.gmra.mxu0 %v1589_v29  ;;  %v3483_v21 = vor.u32 %v3738_v18, %v3482_v17  ;;  %v3730_v17 = vld [vmem:[#allocation5 + $0x730] sm:$0xf0] }
 0x4cd   :  { %1761 = vmatmul.bf16.vlgmr.msrb.gmra.mxu1 %v1589_v29  ;;  %1988 = vmatpush.bf16.msra.mxu0 %v3227_v28  ;;  %v3206_v29 = vld [vmem:[#allocation5 + $0x540] sm:$0xf]  ;;  %v3363_v28 = vor.u32 %v3708_v26, %v3362_v25 }
 0x4ce   :  { %1974 = vmatpush.bf16.msrb.mxu3 %v3223_v27  ;;  %v3207_v32 = vor.u32 %v3669_v30, %v3206_v29  ;;  %v3707_v27 = vld [vmem:[#allocation5 + $0x67c] sm:$0xf]  ;;  %v3364_v29 = vld [vmem:[#allocation5 + $0x684] sm:$0xf0]  ;;  %v3370_v30 = vld [vmem:[#allocation5 + $0x680] sm:$0xf] }
 0x4cf   :  { %v3371_v33 = vor.u32 %v3709_v31, %v3370_v30  ;;  %2185 = vmatpush.bf16.msra.mxu1 %v3363_v28 }
 0x4d0   :  { %1961 = vmatpush.bf16.msrb.mxu2 %v3207_v32  ;;  %v3367_v32 = vor.u32 %v3707_v27, %v3364_v29  ;;  %v3487_v27 = vor.u32 %v3737_v19, %v3484_v22  ;;  %v3725_v22 = vld [vmem:[#allocation5 + $0x70c] sm:$0xf] }
 0x4d1   :  { %1989 = vmatpush.bf16.msra.mxu0 %v3215_v37  ;;  %v3351_v37 = vor.u32 %v3705_v35, %v3350_v34 }
 0x4d2   :  { %1975 = vmatpush.bf16.msrb.mxu3 %v3211_v36  ;;  %v3704_v36 = vld [vmem:[#allocation5 + $0x664] sm:$0xf] }
 0x4d3   :  { %2186 = vmatpush.bf16.msra.mxu1 %v3351_v37 }
 0x4d4   :  { %2197 = vmatpush.bf16.msra.mxu2 %v3391_v14  ;;  %v3311_v14 = vor.u32 %v3694_v12, %v3310_v11  ;;  %v3446_v11 = vld [vmem:[#allocation5 + $0x720] sm:$0xf]  ;;  %v3729_v12 = vld [vmem:[#allocation5 + $0x728] sm:$0xf0] }
 0x4d5   :  { %2412 = vmatpush.bf16.msrb.mxu0 %v3483_v21  ;;  %v3726_v21 = vld [vmem:[#allocation5 + $0x710] sm:$0xf0] }
 0x4d6   :  { %2211 = vmatpush.bf16.msra.mxu3 %v3395_v15  ;;  %v1817_v15 = vld [vmem:[#allocation7 + $0x15] sm:$0x7] }
 0x4d7   :  { %v1820_v16 = vperm.slane %v1817_v15, 0  ;;  %v1821_v31 = vperm.slane %v1817_v15, 1 }
 0x4d8   :  { %2198 = vmatpush.bf16.msra.mxu2 %v3379_v23  ;;  %v3490_v23 = vld [vmem:[#allocation5 + $0x770] sm:$0xf] }
 0x4da   :  { %2212 = vmatpush.bf16.msra.mxu3 %v3383_v24  ;;  %v3739_v24 = vld [vmem:[#allocation5 + $0x778] sm:$0xf0] }
 0x4db   :  { %v3491_v28 = vor.u32 %v3739_v24, %v3490_v23  ;;  %v3436_v24 = vld [vmem:[#allocation5 + $0x714] sm:$0xf0] }
 0x4dc   :  { %2199 = vmatpush.bf16.msra.mxu2 %v3367_v32 }
 0x4de   :  { %2213 = vmatpush.bf16.msra.mxu3 %v3371_v33 }
 0x549   :  { %v1748_v41 = vpop.f32.mrf.mxu0 }
 0x54a   :  { %v1762_v44 = vpop.f32.mrf.mxu1  ;;  %v1749_v51 = vadd.f32 %v1748_v41, %v1592_v45  ;;  %v3355_v41 = vor.u32 %v3704_v36, %v3352_v38  ;;  %v1822_v38 = vperm.slane %v1817_v15, 2  ;;  %v3448_v15 = vld [vmem:[#allocation5 + $0x72c] sm:$0xf0] }
 0x54b   :  { %v1763_v57 = vadd.f32 %v1762_v44, %v1593_v52  ;;  %v3702_v44 = vld [vmem:[#allocation5 + $0x650] sm:$0xf0] }
 0x54c   :  { %v1775_v55 = vmax.f32 %v1749_v51, 0.0  ;;  %2200 = vmatpush.bf16.msra.mxu2 %v3355_v41 }
 0x54e   :  { %v1777_v61 = vsub.f32 %v1775_v55, %v1763_v57 }
 0x54f   :  { %v1734_v40 = vpop.f32.mrf.mxu3 }
 0x550   :  { %v1735_v42 = vadd.f32 %v1734_v40, %v1591_v39  ;;  %v3706_v40 = vld [vmem:[#allocation5 + $0x670] sm:$0xf0] }
 0x551   :  { %v1750_v49 = vpop.f32.mrf.mxu0 }
 0x552   :  { %v1767_v43 = vmul.f32 0.5, %v1735_v42  ;;  %v1751_v54 = vadd.f32 %v1750_v49, %v1592_v45  ;;  %v1764_v56 = vpop.f32.mrf.mxu1  ;;  %v3701_v45 = vld [vmem:[#allocation5 + $0x64c] sm:$0xf]  ;;  %v3703_v49 = vld [vmem:[#allocation5 + $0x658] sm:$0xf0] }
 0x553   :  { %v1765_v62 = vadd.f32 %v1764_v56, %v1593_v52  ;;  %v3326_v52 = vld [vmem:[#allocation5 + $0x630] sm:$0xf]  ;;  %v3328_v56 = vld [vmem:[#allocation5 + $0x63c] sm:$0xf0] }
 0x554   :  { %3784 = vtanh.f32 %v1767_v43  ;;  %v1776_v59 = vmax.f32 %v1751_v54, 0.0  ;;  %v3338_v43 = vld [vmem:[#allocation5 + $0x648] sm:$0xf]  ;;  %v3698_v54 = vld [vmem:[#allocation5 + $0x634] sm:$0xf] }
 0x556   :  { %v1778_v1 = vsub.f32 %v1776_v59, %v1765_v62  ;;  %v3331_v59 = vor.u32 %v3698_v54, %v3328_v56 }
 0x557   :  { %v1736_v46 = vpop.f32.mrf.mxu3 }
 0x558   :  { %v1737_v47 = vadd.f32 %v1736_v46, %v1591_v39  ;;  %v3358_v39 = vld [vmem:[#allocation5 + $0x668] sm:$0xf]  ;;  %v3339_v46 = vor.u32 %v3702_v44, %v3338_v43 }
 0x559   :  { %v3359_v42 = vor.u32 %v3706_v40, %v3358_v39 }
 0x55a   :  { %v3785_v48 = vpop.eup %3784  ;;  %v1768_v50 = vmul.f32 0.5, %v1737_v47  ;;  %v3340_v47 = vld [vmem:[#allocation5 + $0x654] sm:$0xf0]  ;;  %2187 = vmatpush.bf16.msra.mxu1 %v3339_v46 }
 0x55b   :  { %v1771_v53 = vadd.f32 1.0, %v3785_v48  ;;  %2214 = vmatpush.bf16.msra.mxu3 %v3359_v42  ;;  %v3346_v48 = vld [vmem:[#allocation5 + $0x650] sm:$0xf] }
 0x55c   :  { %3786 = vtanh.f32 %v1768_v50  ;;  %v3343_v50 = vor.u32 %v3701_v45, %v3340_v47  ;;  %v3347_v51 = vor.u32 %v3703_v49, %v3346_v48 }
 0x55d   :  { %v1773_v58 = vmul.f32 0.5, %v1771_v53  ;;  %v3699_v53 = vld [vmem:[#allocation5 + $0x638] sm:$0xf0] }
 0x55e   :  { %2201 = vmatpush.bf16.msra.mxu2 %v3343_v50  ;;  %v3327_v55 = vor.u32 %v3699_v53, %v3326_v52 }
 0x55f   :  { %v1779_v0 = vmul.f32 %v1777_v61, %v1773_v58  ;;  %2215 = vmatpush.bf16.msra.mxu3 %v3347_v51  ;;  %v3700_v58 = vld [vmem:[#allocation5 + $0x640] sm:$0xf0]  ;;  %v3314_v61 = vld [vmem:[#allocation5 + $0x618] sm:$0xf] }
 0x560   :  { %2188 = vmatpush.bf16.msra.mxu1 %v3327_v55 }
 0x561   :  { %v1781_v4 = vadd.f32 %v1779_v0, %v1763_v57  ;;  %v3334_v57 = vld [vmem:[#allocation5 + $0x638] sm:$0xf] }
 0x562   :  { %v3787_v60 = vpop.eup %3786  ;;  %2202 = vmatpush.bf16.msra.mxu2 %v3331_v59  ;;  %v3734_v59 = vld [vmem:[#allocation5 + $0x754] sm:$0xf] }
 0x563   :  { %v1772_v63 = vadd.f32 1.0, %v3787_v60  ;;  %v3335_v60 = vor.u32 %v3700_v58, %v3334_v57  ;;  %v3470_v57 = vld [vmem:[#allocation5 + $0x750] sm:$0xf]  ;;  %v3735_v58 = vld [vmem:[#allocation5 + $0x758] sm:$0xf0] }
 0x565   :  { %v1774_v2 = vmul.f32 0.5, %v1772_v63  ;;  %2216 = vmatpush.bf16.msra.mxu3 %v3335_v60  ;;  %v3695_v63 = vld [vmem:[#allocation5 + $0x61c] sm:$0xf]  ;;  %v3471_v60 = vor.u32 %v3735_v58, %v3470_v57 }
 0x567   :  { %v1780_v3 = vmul.f32 %v1778_v1, %v1774_v2  ;;  %v3316_v1 = vld [vmem:[#allocation5 + $0x624] sm:$0xf0]  ;;  %v3322_v2 = vld [vmem:[#allocation5 + $0x620] sm:$0xf]  ;;  %2413 = vmatpush.bf16.msrb.mxu0 %v3471_v60 }
 0x569   :  { %v1782_v5 = vadd.f32 %v1780_v3, %v1765_v62  ;;  %v3696_v62 = vld [vmem:[#allocation5 + $0x620] sm:$0xf0]  ;;  %v3697_v3 = vld [vmem:[#allocation5 + $0x628] sm:$0xf0] }
 0x56a   :  { %v3315_v0 = vor.u32 %v3696_v62, %v3314_v61  ;;  %v3472_v61 = vld [vmem:[#allocation5 + $0x75c] sm:$0xf0]  ;;  %v3478_v62 = vld [vmem:[#allocation5 + $0x758] sm:$0xf] }
 0x56b   :  { %v1818_v6 = vpack.c.bf16 %v1782_v5, %v1781_v4  ;;  %v3319_v4 = vor.u32 %v3695_v63, %v3316_v1  ;;  %v3323_v5 = vor.u32 %v3697_v3, %v3322_v2  ;;  %v3736_v63 = vld [vmem:[#allocation5 + $0x760] sm:$0xf0]  ;;  %v3458_v2 = vld [vmem:[#allocation5 + $0x738] sm:$0xf] }
 0x56c   :  { %2189 = vmatpush.bf16.msra.mxu1 %v3315_v0  ;;  %v3475_v0 = vor.u32 %v3734_v59, %v3472_v61  ;;  %v3479_v1 = vor.u32 %v3736_v63, %v3478_v62  ;;  %v3732_v3 = vld [vmem:[#allocation5 + $0x740] sm:$0xf0] }
 0x56d   :  { %1962 = vmatmul.bf16.vlgmr.msrb.gmra.mxu2 %v1818_v6  ;;  %1976 = vmatmul.bf16.vlgmr.msrb.gmra.mxu3 %v1818_v6 }
 0x56e   :  { %1990 = vmatmul.bf16.vlgmr.msra.gmra.mxu0 %v1818_v6  ;;  %2203 = vmatpush.bf16.msra.mxu2 %v3319_v4  ;;  %v3302_v6 = vld [vmem:[#allocation5 + $0x600] sm:$0xf]  ;;  %v3731_v4 = vld [vmem:[#allocation5 + $0x73c] sm:$0xf] }
 0x56f   :  { %2217 = vmatpush.bf16.msra.mxu3 %v3323_v5  ;;  %v3303_v9 = vor.u32 %v3693_v7, %v3302_v6  ;;  %v3459_v5 = vor.u32 %v3732_v3, %v3458_v2  ;;  %v3460_v6 = vld [vmem:[#allocation5 + $0x744] sm:$0xf0]  ;;  %v3466_v7 = vld [vmem:[#allocation5 + $0x740] sm:$0xf] }
 0x570   :  { %v3463_v8 = vor.u32 %v3731_v4, %v3460_v6 }
 0x571   :  { %2190 = vmatpush.bf16.msra.mxu1 %v3303_v9  ;;  %v3733_v9 = vld [vmem:[#allocation5 + $0x748] sm:$0xf0]  ;;  %2414 = vmatpush.bf16.msrb.mxu0 %v3459_v5 }
 0x572   :  { %2204 = vmatpush.bf16.msra.mxu2 %v3307_v13  ;;  %v3467_v10 = vor.u32 %v3733_v9, %v3466_v7  ;;  %v3728_v13 = vld [vmem:[#allocation5 + $0x724] sm:$0xf] }
 0x573   :  { %2218 = vmatpush.bf16.msra.mxu3 %v3311_v14  ;;  %v3447_v14 = vor.u32 %v3729_v12, %v3446_v11  ;;  %v3451_v18 = vor.u32 %v3728_v13, %v3448_v15 }
 0x575   :  { %2426 = vmatpush.bf16.msrb.mxu1 %v3487_v27  ;;  %2415 = vmatpush.bf16.msrb.mxu0 %v3447_v14  ;;  %v3439_v27 = vor.u32 %v3725_v22, %v3436_v24 }
 0x576   :  { %2440 = vmatpush.bf16.msrb.mxu2 %v3491_v28 }
 0x579   :  { %2427 = vmatpush.bf16.msrb.mxu1 %v3475_v0 }
 0x57a   :  { %2441 = vmatpush.bf16.msrb.mxu2 %v3479_v1 }
 0x57d   :  { %2428 = vmatpush.bf16.msrb.mxu1 %v3463_v8 }
 0x57e   :  { %2442 = vmatpush.bf16.msrb.mxu2 %v3467_v10 }
 0x581   :  { %2429 = vmatpush.bf16.msrb.mxu1 %v3451_v18 }
 0x585   :  { %2430 = vmatpush.bf16.msrb.mxu1 %v3439_v27 }
 0x5eb   :  { %v1991_v30 = vpop.f32.mrf.mxu0 }
 0x5ec   :  { %v1992_v43 = vadd.f32 %v1991_v30, %v1822_v38  ;;  %v3723_v30 = vld [vmem:[#allocation5 + $0x6f8] sm:$0xf0] }
 0x5f0   :  { %v1963_v20 = vpop.f32.mrf.mxu2  ;;  %v1977_v26 = vpop.f32.mrf.mxu3 }
 0x5f1   :  { %v1964_v25 = vadd.f32 %v1963_v20, %v1820_v16  ;;  %v1978_v37 = vadd.f32 %v1977_v26, %v1821_v31  ;;  %v3434_v20 = vld [vmem:[#allocation5 + $0x708] sm:$0xf]  ;;  %v3727_v26 = vld [vmem:[#allocation5 + $0x718] sm:$0xf0] }
 0x5f2   :  { %v3435_v23 = vor.u32 %v3726_v21, %v3434_v20 }
 0x5f3   :  { %v1996_v29 = vmul.f32 0.5, %v1964_v25  ;;  %v2004_v41 = vmax.f32 %v1978_v37, 0.0  ;;  %v1993_v42 = vpop.f32.mrf.mxu0  ;;  %v3442_v25 = vld [vmem:[#allocation5 + $0x710] sm:$0xf] }
 0x5f4   :  { %v1994_v48 = vadd.f32 %v1993_v42, %v1822_v38  ;;  %v3443_v28 = vor.u32 %v3727_v26, %v3442_v25  ;;  %2416 = vmatpush.bf16.msrb.mxu0 %v3435_v23  ;;  %v3410_v38 = vld [vmem:[#allocation5 + $0x6d8] sm:$0xf]  ;;  %v3412_v42 = vld [vmem:[#allocation5 + $0x6e4] sm:$0xf0] }
 0x5f5   :  { %3788 = vtanh.f32 %v1996_v29  ;;  %v2006_v47 = vsub.f32 %v2004_v41, %v1992_v43  ;;  %v3422_v29 = vld [vmem:[#allocation5 + $0x6f0] sm:$0xf]  ;;  %v2275_v25 = vld [vmem:[#allocation7 + $0x1b] sm:$0x7] }
 0x5f6   :  { %v2278_v26 = vperm.slane %v2275_v25, 0 }
 0x5f8   :  { %v1965_v32 = vpop.f32.mrf.mxu2  ;;  %v1979_v36 = vpop.f32.mrf.mxu3 }
 0x5f9   :  { %v1966_v33 = vadd.f32 %v1965_v32, %v1820_v16  ;;  %v1980_v40 = vadd.f32 %v1979_v36, %v1821_v31  ;;  %v3454_v16 = vld [vmem:[#allocation5 + $0x728] sm:$0xf]  ;;  %v3722_v31 = vld [vmem:[#allocation5 + $0x6f4] sm:$0xf]  ;;  %v3423_v32 = vor.u32 %v3723_v30, %v3422_v29 }
 0x5fa   :  { %v3455_v19 = vor.u32 %v3730_v17, %v3454_v16 }
 0x5fb   :  { %v3789_v34 = vpop.eup %3788  ;;  %v1997_v35 = vmul.f32 0.5, %v1966_v33  ;;  %v2005_v45 = vmax.f32 %v1980_v40, 0.0  ;;  %v3424_v33 = vld [vmem:[#allocation5 + $0x6fc] sm:$0xf0]  ;;  %2417 = vmatpush.bf16.msrb.mxu0 %v3423_v32  ;;  %v3719_v40 = vld [vmem:[#allocation5 + $0x6dc] sm:$0xf] }
 0x5fc   :  { %v2000_v39 = vadd.f32 1.0, %v3789_v34  ;;  %2443 = vmatpush.bf16.msrb.mxu2 %v3455_v19  ;;  %v3430_v34 = vld [vmem:[#allocation5 + $0x6f8] sm:$0xf]  ;;  %v3427_v36 = vor.u32 %v3722_v31, %v3424_v33  ;;  %v2279_v31 = vperm.slane %v2275_v25, 1  ;;  %v2280_v32 = vperm.slane %v2275_v25, 2 }
 0x5fd   :  { %3790 = vtanh.f32 %v1997_v35  ;;  %v2007_v52 = vsub.f32 %v2005_v45, %v1994_v48  ;;  %v3724_v35 = vld [vmem:[#allocation5 + $0x700] sm:$0xf0]  ;;  %v3415_v45 = vor.u32 %v3719_v40, %v3412_v42 }
 0x5fe   :  { %v2002_v44 = vmul.f32 0.5, %v2000_v39  ;;  %v3431_v37 = vor.u32 %v3724_v35, %v3430_v34  ;;  %2431 = vmatpush.bf16.msrb.mxu1 %v3427_v36  ;;  %v3720_v39 = vld [vmem:[#allocation5 + $0x6e0] sm:$0xf0] }
 0x5ff   :  { %v3411_v41 = vor.u32 %v3720_v39, %v3410_v38 }
 0x600   :  { %v2008_v50 = vmul.f32 %v2006_v47, %v2002_v44  ;;  %2444 = vmatpush.bf16.msrb.mxu2 %v3443_v28  ;;  %v3721_v44 = vld [vmem:[#allocation5 + $0x6e8] sm:$0xf0]  ;;  %v2046_v47 = vld [vmem:[#allocation7 + $0x18] sm:$0x7] }
 0x601   :  { %2418 = vmatpush.bf16.msrb.mxu0 %v3411_v41  ;;  %v2049_v57 = vperm.slane %v2046_v47, 0  ;;  %v2050_v63 = vperm.slane %v2046_v47, 1  ;;  %v2051_v6 = vperm.slane %v2046_v47, 2 }
 0x602   :  { %v2010_v54 = vadd.f32 %v2008_v50, %v1992_v43  ;;  %v3418_v43 = vld [vmem:[#allocation5 + $0x6e0] sm:$0xf]  ;;  %2432 = vmatpush.bf16.msrb.mxu1 %v3415_v45  ;;  %v3716_v50 = vld [vmem:[#allocation5 + $0x6c4] sm:$0xf] }
 0x603   :  { %v3791_v46 = vpop.eup %3790 }
 0x604   :  { %v2001_v49 = vadd.f32 1.0, %v3791_v46  ;;  %2445 = vmatpush.bf16.msrb.mxu2 %v3431_v37  ;;  %v3419_v46 = vor.u32 %v3721_v44, %v3418_v43 }
 0x606   :  { %v2003_v51 = vmul.f32 0.5, %v2001_v49  ;;  %v3717_v49 = vld [vmem:[#allocation5 + $0x6c8] sm:$0xf0] }
 0x608   :  { %v2009_v53 = vmul.f32 %v2007_v52, %v2003_v51  ;;  %2446 = vmatpush.bf16.msrb.mxu2 %v3419_v46  ;;  %v3400_v52 = vld [vmem:[#allocation5 + $0x6cc] sm:$0xf0] }
 0x60a   :  { %v2011_v55 = vadd.f32 %v2009_v53, %v1994_v48  ;;  %v3398_v48 = vld [vmem:[#allocation5 + $0x6c0] sm:$0xf]  ;;  %v3406_v53 = vld [vmem:[#allocation5 + $0x6c8] sm:$0xf] }
 0x60b   :  { %v3399_v51 = vor.u32 %v3717_v49, %v3398_v48 }
 0x60c   :  { %v2047_v56 = vpack.c.bf16 %v2011_v55, %v2010_v54  ;;  %v3718_v54 = vld [vmem:[#allocation5 + $0x6d0] sm:$0xf0]  ;;  %v3403_v55 = vor.u32 %v3716_v50, %v3400_v52 }
 0x60d   :  { %2419 = vmatpush.bf16.msrb.mxu0 %v3399_v51 }
 0x60e   :  { %2191 = vmatmul.bf16.vlgmr.msra.gmra.mxu1 %v2047_v56  ;;  %2205 = vmatmul.bf16.vlgmr.msra.gmra.mxu2 %v2047_v56 }
 0x60f   :  { %2219 = vmatmul.bf16.vlgmr.msra.gmra.mxu3 %v2047_v56  ;;  %v3407_v56 = vor.u32 %v3718_v54, %v3406_v53  ;;  %2433 = vmatpush.bf16.msrb.mxu1 %v3403_v55 }
 0x611   :  { %2447 = vmatpush.bf16.msrb.mxu2 %v3407_v56 }
 0x68b   :  { %v2192_v58 = vpop.f32.mrf.mxu1 }
 0x68c   :  { %v2193_v59 = vadd.f32 %v2192_v58, %v2049_v57 }
 0x68e   :  { %v2225_v60 = vmul.f32 0.5, %v2193_v59 }
 0x690   :  { %3792 = vtanh.f32 %v2225_v60 }
 0x691   :  { %v2206_v61 = vpop.f32.mrf.mxu2 }
 0x692   :  { %v2220_v62 = vpop.f32.mrf.mxu3  ;;  %v2207_v4 = vadd.f32 %v2206_v61, %v2050_v63 }
 0x693   :  { %v2194_v0 = vpop.f32.mrf.mxu1  ;;  %v2221_v12 = vadd.f32 %v2220_v62, %v2051_v6 }
 0x694   :  { %v2195_v1 = vadd.f32 %v2194_v0, %v2049_v57  ;;  %v2233_v9 = vmax.f32 %v2207_v4, 0.0 }
 0x696   :  { %v3793_v2 = vpop.eup %3792  ;;  %v2226_v3 = vmul.f32 0.5, %v2195_v1  ;;  %v2235_v15 = vsub.f32 %v2233_v9, %v2221_v12 }
 0x697   :  { %v2229_v5 = vadd.f32 1.0, %v3793_v2 }
 0x698   :  { %3794 = vtanh.f32 %v2226_v3 }
 0x699   :  { %v2208_v7 = vpop.f32.mrf.mxu2  ;;  %v2231_v11 = vmul.f32 0.5, %v2229_v5 }
 0x69a   :  { %v2209_v8 = vadd.f32 %v2208_v7, %v2050_v63  ;;  %v2222_v10 = vpop.f32.mrf.mxu3 }
 0x69b   :  { %v2223_v17 = vadd.f32 %v2222_v10, %v2051_v6  ;;  %v2237_v18 = vmul.f32 %v2235_v15, %v2231_v11 }
 0x69c   :  { %v2234_v13 = vmax.f32 %v2209_v8, 0.0 }
 0x69d   :  { %v2239_v22 = vadd.f32 %v2237_v18, %v2221_v12 }
 0x69e   :  { %v3795_v14 = vpop.eup %3794  ;;  %v2236_v20 = vsub.f32 %v2234_v13, %v2223_v17 }
 0x69f   :  { %v2230_v16 = vadd.f32 1.0, %v3795_v14 }
 0x6a1   :  { %v2232_v19 = vmul.f32 0.5, %v2230_v16 }
 0x6a3   :  { %v2238_v21 = vmul.f32 %v2236_v20, %v2232_v19 }
 0x6a5   :  { %v2240_v23 = vadd.f32 %v2238_v21, %v2223_v17 }
 0x6a7   :  { %v2276_v24 = vpack.c.bf16 %v2240_v23, %v2239_v22 }
 0x6a9   :  { %2420 = vmatmul.bf16.vlgmr.msrb.gmra.mxu0 %v2276_v24  ;;  %2434 = vmatmul.bf16.vlgmr.msrb.gmra.mxu1 %v2276_v24 }
 0x6aa   :  { %2448 = vmatmul.bf16.vlgmr.msrb.gmra.mxu2 %v2276_v24 }
 0x726   :  { %v2421_v27 = vpop.f32.mrf.mxu0  ;;  %v2435_v30 = vpop.f32.mrf.mxu1 }
 0x727   :  { %v2422_v28 = vadd.f32 %v2421_v27, %v2278_v26  ;;  %v2436_v34 = vadd.f32 %v2435_v30, %v2279_v31 }
 0x729   :  { %v2454_v29 = vmul.f32 0.5, %v2422_v28  ;;  %v2462_v41 = vmax.f32 %v2436_v34, 0.0 }
 0x72b   :  { %3796 = vtanh.f32 %v2454_v29 }
 0x72d   :  { %v2449_v33 = vpop.f32.mrf.mxu2 }
 0x72e   :  { %v2423_v35 = vpop.f32.mrf.mxu0  ;;  %v2450_v37 = vadd.f32 %v2449_v33, %v2280_v32  ;;  %v2437_v42 = vpop.f32.mrf.mxu1 }
 0x72f   :  { %v2424_v36 = vadd.f32 %v2423_v35, %v2278_v26  ;;  %v2438_v47 = vadd.f32 %v2437_v42, %v2279_v31 }
 0x730   :  { %v2464_v44 = vsub.f32 %v2462_v41, %v2450_v37 }
 0x731   :  { %v3797_v38 = vpop.eup %3796  ;;  %v2455_v39 = vmul.f32 0.5, %v2424_v36  ;;  %v2463_v53 = vmax.f32 %v2438_v47, 0.0 }
 0x732   :  { %v2458_v40 = vadd.f32 1.0, %v3797_v38 }
 0x733   :  { %3798 = vtanh.f32 %v2455_v39 }
 0x734   :  { %v2460_v43 = vmul.f32 0.5, %v2458_v40 }
 0x735   :  { %v2451_v45 = vpop.f32.mrf.mxu2 }
 0x736   :  { %v2466_v46 = vmul.f32 %v2464_v44, %v2460_v43  ;;  %v2452_v49 = vadd.f32 %v2451_v45, %v2280_v32 }
 0x738   :  { %v2468_v48 = vadd.f32 %v2466_v46, %v2450_v37  ;;  %v2465_v55 = vsub.f32 %v2463_v53, %v2452_v49 }
 0x739   :  { %v3799_v50 = vpop.eup %3798 }
 0x73a   :  { %v2470_v51 = vmul.f32 0.5, %v2468_v48  ;;  %v2459_v52 = vadd.f32 1.0, %v3799_v50 }
 0x73c   :  { %3800 = vtanh.f32 %v2470_v51  ;;  %v2461_v54 = vmul.f32 0.5, %v2459_v52 }
 0x73e   :  { %v2467_v56 = vmul.f32 %v2465_v55, %v2461_v54 }
 0x740   :  { %v2469_v57 = vadd.f32 %v2467_v56, %v2452_v49 }
 0x742   :  { %v3801_v58 = vpop.eup %3800  ;;  %v2471_v59 = vmul.f32 0.5, %v2469_v57 }
 0x743   :  { %v2474_v60 = vadd.f32 1.0, %v3801_v58 }
 0x744   :  { %3802 = vtanh.f32 %v2471_v59 }
 0x745   :  { %v2476_v61 = vmul.f32 0.5, %v2474_v60 }
 0x747   :  { %2478 = vst [vmem:[#allocation8] sm:$0xff] %v2476_v61 }
 0x74a   :  { %v3803_v62 = vpop.eup %3802 }
 0x74b   :  { %v2475_v63 = vadd.f32 1.0, %v3803_v62 }
 0x74d   :  { %v2477_v0 = vmul.f32 0.5, %v2475_v63 }
 0x74f   :  { %2479 = vst [vmem:[#allocation8 + $0x8] sm:$0xff] %v2477_v0 }
 0x750   :  { %2492 = dma.vmem_to_hbm [thread:$0]  %s2485_s21, 256, %s2487_s24, [#allocation4], %s3918_s25, %s3918_s25, %s3919_s26  }
 0x751   :  { %3904 = dma.done.wait [#allocation4], 256  }
 0x752   :  { %3905 = vsyncadd [#allocation4], 4294967040 }
 0x753   :  { %2497 = vsyncpa [#allocation3], 1 }
 0x754   :  { %2498 = vsyncpa [#allocation6], 1 }
 0x755   :  { %2499 = vsyncpa [#allocation4], 1 }

</bundles_post_ra>
